<compile_context>
chip_gen: v6e
topology: v6e:2x2x1
jax: 0.10.0
libtpu: 0.0.40
codegen_flags: <defaults>
</compile_context>

<pallas_src>
import jax
import jax.numpy as jnp
from jax.experimental import pallas as pl
from jax.experimental.pallas import tpu as pltpu

BN_EPS = 1e-5


def _se_conv_bn_conv_kernel(x_ref, s_ref, w1_ref, gamma_ref, beta_ref, w2_ref, o_ref):
    """Fused: W1*diag(sigmoid(s)) @ X -> batchnorm (batch stats) -> W2 @ (.).

    x_ref:     (C_in, R)    channel-major activations, R = N*H*W (N == 1)
    s_ref:     (1, C_in)    SE logits (pre-sigmoid), folded into W1's columns
    w1_ref:    (C_mid, C_in)
    gamma_ref: (C_mid, 1)
    beta_ref:  (C_mid, 1)
    w2_ref:    (C_out, C_mid)
    o_ref:     (C_out, R)
    """
    # --- Fold SE gate into W1 (scale (C_mid, C_in) weight, not the (C_in, R) activations) ---
    gate = jax.nn.sigmoid(s_ref[...])                         # (1, C_in), f32
    w1s = (w1_ref[...] * gate).astype(jnp.bfloat16)           # (C_mid, C_in) bf16 for MXU

    x = x_ref[...].astype(jnp.bfloat16)                       # (C_in, R) bf16 for MXU

    # --- 1x1 conv #1 (C_in -> C_mid): MXU matmul, f32 accumulation ---
    y = jnp.dot(w1s, x, preferred_element_type=jnp.float32)   # (C_mid, R) f32

    # --- BatchNorm2d, training-mode batch statistics, one-pass stats (biased var) ---
    inv_r = 1.0 / y.shape[1]
    mean = jnp.sum(y, axis=1, keepdims=True) * inv_r          # (C_mid, 1)
    mean_sq = jnp.sum(y * y, axis=1, keepdims=True) * inv_r   # E[y^2]
    var = mean_sq - mean * mean                               # biased variance
    a = gamma_ref[...] * jax.lax.rsqrt(var + BN_EPS)          # fused scale
    b = beta_ref[...] - mean * a                              # fused shift
    y_bn = (y * a + b).astype(jnp.bfloat16)                   # single FMA-style sweep

    # --- 1x1 conv #2 (C_mid -> C_out): MXU matmul, f32 accumulation ---
    o_ref[...] = jnp.dot(w2_ref[...].astype(jnp.bfloat16), y_bn,
                         preferred_element_type=jnp.float32)


def se_conv_bn_conv(x152, x156, w1, gamma, beta, w2):
    """x152: (N, C_in, H, W) NCHW; x156: (N, C_in, 1, 1). Returns (N, C_out, H, W).

    Channel-major layout means NO transposes are needed on either side of the
    kernel; only free reshapes.
    """
    N, C_in, H, W = x152.shape
    # TODO(synk): N > 1 needs per-sample SE gates and cross-batch BN stats (two-phase
    # R-tiled grid); the source module has N == 1, so we guard explicitly.
    assert N == 1, "kernel assumes N == 1 (per-sample SE gate + batch-stat BN)"
    C_mid = w1.shape[0]
    C_out = w2.shape[0]
    R = N * H * W

    x_cm = x152.reshape(C_in, R)                 # channel-major, no transpose (N == 1)
    s_row = x156.reshape(1, C_in)                # (1, C_in) SE logits
    w1_2d = w1.reshape(C_mid, C_in)
    w2_2d = w2.reshape(C_out, C_mid)
    gamma_col = gamma.reshape(C_mid, 1)
    beta_col = beta.reshape(C_mid, 1)

    out_cm = pl.pallas_call(
        _se_conv_bn_conv_kernel,
        out_shape=jax.ShapeDtypeStruct((C_out, R), jnp.float32),
        in_specs=[
            pl.BlockSpec(memory_space=pltpu.MemorySpace.VMEM),  # x (channel-major)
            pl.BlockSpec(memory_space=pltpu.MemorySpace.VMEM),  # SE logits
            pl.BlockSpec(memory_space=pltpu.MemorySpace.VMEM),  # w1
            pl.BlockSpec(memory_space=pltpu.MemorySpace.VMEM),  # gamma
            pl.BlockSpec(memory_space=pltpu.MemorySpace.VMEM),  # beta
            pl.BlockSpec(memory_space=pltpu.MemorySpace.VMEM),  # w2
        ],
        out_specs=pl.BlockSpec(memory_space=pltpu.MemorySpace.VMEM),
        compiler_params=pltpu.CompilerParams(vmem_limit_bytes=32 * 1024 * 1024),
    )(x_cm, s_row, w1_2d, gamma_col, beta_col, w2_2d)

    # (C_out, R) is already NCHW order for N == 1: free reshape, no transpose.
    return out_cm.reshape(N, C_out, H, W)


def _reference(x152, x156, w1, gamma, beta, w2):
    """Plain-JAX f32 reference mirroring the PyTorch forward (training-mode BN)."""
    s = jax.nn.sigmoid(x156)                                   # (N, C_in, 1, 1)
    xs = x152 * s
    y = jnp.einsum('nchw,oc->nohw', xs, w1)                    # 1x1 conv
    mean = jnp.mean(y, axis=(0, 2, 3), keepdims=True)
    var = jnp.mean((y - mean) ** 2, axis=(0, 2, 3), keepdims=True)
    y_bn = (y - mean) / jnp.sqrt(var + BN_EPS)
    y_bn = y_bn * gamma.reshape(1, -1, 1, 1) + beta.reshape(1, -1, 1, 1)
    return jnp.einsum('nchw,oc->nohw', y_bn, w2)


if __name__ == "__main__":
    key = jax.random.PRNGKey(0)
    k_x, k_s, k_w1, k_w2, k_g, k_b = jax.random.split(key, 6)

    N, C_in, H, W = 1, 336, 14, 14
    C_mid, C_out = 112, 672

    x152 = jax.random.normal(k_x, (N, C_in, H, W), dtype=jnp.float32)
    x156 = jax.random.normal(k_s, (N, C_in, 1, 1), dtype=jnp.float32)

    # Deterministic parameter init (conv weights fan-in scaled, BN affine params)
    w1 = jax.random.normal(k_w1, (C_mid, C_in), dtype=jnp.float32) * (1.0 / C_in) ** 0.5
    w2 = jax.random.normal(k_w2, (C_out, C_mid), dtype=jnp.float32) * (1.0 / C_mid) ** 0.5
    gamma = 1.0 + 0.1 * jax.random.normal(k_g, (C_mid,), dtype=jnp.float32)
    beta = 0.1 * jax.random.normal(k_b, (C_mid,), dtype=jnp.float32)

    out = se_conv_bn_conv(x152, x156, w1, gamma, beta, w2)
    out = jax.block_until_ready(out)

    ref = _reference(x152, x156, w1, gamma, beta, w2)
    assert out.shape == (N, C_out, H, W), out.shape
    # bf16 MXU inputs with f32 accumulation: tolerance loosened vs pure-f32 reference.
    assert jnp.allclose(out, ref, atol=5e-2, rtol=5e-2), float(jnp.max(jnp.abs(out - ref)))

    print("KERNEL_OK")
</pallas_src>

<mosaic_0001>
module attributes {stable_mosaic.version = 11 : i64} {
  func.func @_se_conv_bn_conv_kernel(%arg0: memref<336x196xf32, #tpu.memory_space<vmem>>, %arg1: memref<1x336xf32, #tpu.memory_space<vmem>>, %arg2: memref<112x336xf32, #tpu.memory_space<vmem>>, %arg3: memref<112x1xf32, #tpu.memory_space<vmem>>, %arg4: memref<112x1xf32, #tpu.memory_space<vmem>>, %arg5: memref<672x112xf32, #tpu.memory_space<vmem>>, %arg6: memref<672x196xf32, #tpu.memory_space<vmem>>) attributes {dimension_semantics = [], scalar_prefetch = 0 : i64, scratch_operands = 0 : i64, tpu.core_type = #tpu.core_type<tc>} {
    %c0 = arith.constant 0 : index
    %c0_0 = arith.constant 0 : index
    %0 = vector.load %arg1[%c0, %c0_0] : memref<1x336xf32, #tpu.memory_space<vmem>>, vector<1x336xf32>
    %1 = arith.negf %0 : vector<1x336xf32>
    %2 = math.exp %1 : vector<1x336xf32>
    %cst = arith.constant 1.000000e+00 : f32
    %3 = vector.broadcast %cst : f32 to vector<1x336xf32>
    %4 = arith.addf %3, %2 : vector<1x336xf32>
    %5 = arith.divf %3, %4 : vector<1x336xf32>
    %c0_1 = arith.constant 0 : index
    %c0_2 = arith.constant 0 : index
    %6 = vector.load %arg2[%c0_1, %c0_2] : memref<112x336xf32, #tpu.memory_space<vmem>>, vector<112x336xf32>
    %7 = vector.broadcast %5 : vector<1x336xf32> to vector<112x336xf32>
    %8 = arith.mulf %6, %7 : vector<112x336xf32>
    %9 = arith.truncf %8 : vector<112x336xf32> to vector<112x336xbf16>
    %c0_3 = arith.constant 0 : index
    %c0_4 = arith.constant 0 : index
    %10 = vector.load %arg0[%c0_3, %c0_4] : memref<336x196xf32, #tpu.memory_space<vmem>>, vector<336x196xf32>
    %11 = arith.truncf %10 : vector<336x196xf32> to vector<336x196xbf16>
    %cst_5 = arith.constant dense<0.000000e+00> : vector<112x196xf32>
    %12 = tpu.matmul %9, %11, %cst_5 {dimension_numbers = #tpu.dot_dimension_numbers<[1], [0], [0], [1], [0, 0, 1, 1], [], []>} : vector<112x336xbf16>, vector<336x196xbf16>, vector<112x196xf32> -> vector<112x196xf32>
    %cst_6 = arith.constant dense<0.000000e+00> : vector<112xf32>
    %13 = vector.multi_reduction <add>, %12, %cst_6 [1] : vector<112x196xf32> to vector<112xf32>
    %14 = vector.shape_cast %13 : vector<112xf32> to vector<112x1xf32>
    %cst_7 = arith.constant 0.00510204071 : f32
    %15 = vector.broadcast %cst_7 : f32 to vector<112x1xf32>
    %16 = arith.mulf %14, %15 : vector<112x1xf32>
    %17 = arith.mulf %12, %12 : vector<112x196xf32>
    %cst_8 = arith.constant dense<0.000000e+00> : vector<112xf32>
    %18 = vector.multi_reduction <add>, %17, %cst_8 [1] : vector<112x196xf32> to vector<112xf32>
    %19 = vector.shape_cast %18 : vector<112xf32> to vector<112x1xf32>
    %cst_9 = arith.constant 0.00510204071 : f32
    %20 = vector.broadcast %cst_9 : f32 to vector<112x1xf32>
    %21 = arith.mulf %19, %20 : vector<112x1xf32>
    %22 = arith.mulf %16, %16 : vector<112x1xf32>
    %23 = arith.subf %21, %22 : vector<112x1xf32>
    %c0_10 = arith.constant 0 : index
    %c0_11 = arith.constant 0 : index
    %24 = vector.load %arg3[%c0_10, %c0_11] : memref<112x1xf32, #tpu.memory_space<vmem>>, vector<112x1xf32>
    %cst_12 = arith.constant 9.99999974E-6 : f32
    %25 = vector.broadcast %cst_12 : f32 to vector<112x1xf32>
    %26 = arith.addf %23, %25 : vector<112x1xf32>
    %27 = math.rsqrt %26 : vector<112x1xf32>
    %28 = arith.mulf %24, %27 : vector<112x1xf32>
    %c0_13 = arith.constant 0 : index
    %c0_14 = arith.constant 0 : index
    %29 = vector.load %arg4[%c0_13, %c0_14] : memref<112x1xf32, #tpu.memory_space<vmem>>, vector<112x1xf32>
    %30 = arith.mulf %16, %28 : vector<112x1xf32>
    %31 = arith.subf %29, %30 : vector<112x1xf32>
    %32 = vector.broadcast %28 : vector<112x1xf32> to vector<112x196xf32>
    %33 = arith.mulf %12, %32 : vector<112x196xf32>
    %34 = vector.broadcast %31 : vector<112x1xf32> to vector<112x196xf32>
    %35 = arith.addf %33, %34 : vector<112x196xf32>
    %36 = arith.truncf %35 : vector<112x196xf32> to vector<112x196xbf16>
    %c0_15 = arith.constant 0 : index
    %c0_16 = arith.constant 0 : index
    %37 = vector.load %arg5[%c0_15, %c0_16] : memref<672x112xf32, #tpu.memory_space<vmem>>, vector<672x112xf32>
    %38 = arith.truncf %37 : vector<672x112xf32> to vector<672x112xbf16>
    %cst_17 = arith.constant dense<0.000000e+00> : vector<672x196xf32>
    %39 = tpu.matmul %38, %36, %cst_17 {dimension_numbers = #tpu.dot_dimension_numbers<[1], [0], [0], [1], [0, 0, 1, 1], [], []>} : vector<672x112xbf16>, vector<112x196xbf16>, vector<672x196xf32> -> vector<672x196xf32>
    %c0_18 = arith.constant 0 : index
    %c0_19 = arith.constant 0 : index
    %40 = vector.load %arg6[%c0_18, %c0_19] : memref<672x196xf32, #tpu.memory_space<vmem>>, vector<672x196xf32>
    tpu.vector_store %arg6[%c0_18, %c0_19], %39 {strides = array<i32>} : memref<672x196xf32, #tpu.memory_space<vmem>>, vector<672x196xf32>,
    return
  }
}

</mosaic_0001>

<bundles_post_ra>
// kernel: tpu_custom_call.1
= control target key start
LH: loop header
LB: loop body
LE: loop exit
PB: predicated region body
PF: predicated region fallthrough
CT: control target
= control target key end

     0   :  { %v1988_v3 = vmov 0   ;;  %vm278_vm0 = vcmask 654336   ;;  %vm506_vm1 = vcmask 556032   ;;  %vm1137_vm2 = vcmask 916480   ;;  %s3815_s0 = inlined_call_operand.vmem [shape: f32[336,196], index: 0, kind: input, shape index: {}]   ;;  %s3816_s1 = inlined_call_operand.vmem [shape: f32[1,336], index: 1, kind: input, shape index: {}]   ;;  %s3817_s2 = inlined_call_operand.vmem [shape: f32[112,336], index: 2, kind: input, shape index: {}]   ;;  %s3818_s3 = inlined_call_operand.vmem [shape: f32[112,1], index: 3, kind: input, shape index: {}]   ;;  %s3819_s4 = inlined_call_operand.vmem [shape: f32[112,1], index: 4, kind: input, shape index: {}]   ;;  %s3820_s5 = inlined_call_operand.vmem [shape: f32[672,112], index: 5, kind: input, shape index: {}]   ;;  %s3821_s6 = inlined_call_operand.vmem [shape: f32[672,196], index: 6, kind: output, shape index: {}]  }
   0x1   :  { %v181_v0 = vld [vmem:[%s3815_s0 + $0xe8] sm:$0xff]  ;;  %v183_v1 = vld [vmem:[%s3815_s0 + $0xf8] sm:$0xff]  ;;  %v180_v2 = vld [vmem:[%s3815_s0 + $0xe0] sm:$0xff]  ;;  %435 = vmatprep.mubr.bf16.mxu1 %v1988_v3  ;;  %1955 = vset.pattern.permute.xlu0 %v1988_v3 }
   0x2   :  { %v251_v4 = vpack.c.bf16 %v183_v1, %v181_v0  ;;  %v182_v5 = vld [vmem:[%s3815_s0 + $0xf0] sm:$0xff]  ;;  %v177_v6 = vld [vmem:[%s3815_s0 + $0xc8] sm:$0xff]  ;;  %v179_v7 = vld [vmem:[%s3815_s0 + $0xd8] sm:$0xff]  ;;  %1954 = vset.pattern.permute.xlu1 %v1988_v3 }
   0x3   :  { %v250_v8 = vpack.c.bf16 %v182_v5, %v180_v2  ;;  %v249_v9 = vpack.c.bf16 %v179_v7, %v177_v6  ;;  %v176_v10 = vld [vmem:[%s3815_s0 + $0xc0] sm:$0xff]  ;;  %v178_v11 = vld [vmem:[%s3815_s0 + $0xd0] sm:$0xff]  ;;  %v173_v12 = vld [vmem:[%s3815_s0 + $0xa8] sm:$0xff] }
   0x4   :  { %300 = vmatprep.subr.bf16.mxu0 %v251_v4  ;;  %v175_v13 = vld [vmem:[%s3815_s0 + $0xb8] sm:$0xff]  ;;  %v248_v14 = vpack.c.bf16 %v178_v11, %v176_v10  ;;  %v172_v16 = vld [vmem:[%s3815_s0 + $0xa0] sm:$0xff]  ;;  %v174_v17 = vld [vmem:[%s3815_s0 + $0xb0] sm:$0xff] }
   0x5   :  { %301 = vmatpush1.bf16.msra.mxu0 %v250_v8  ;;  %v247_v15 = vpack.c.bf16 %v175_v13, %v173_v12  ;;  %v169_v18 = vld [vmem:[%s3815_s0 + $0x88] sm:$0xff]  ;;  %v171_v19 = vld [vmem:[%s3815_s0 + $0x98] sm:$0xff]  ;;  %v246_v20 = vpack.c.bf16 %v174_v17, %v172_v16  ;;  %v168_v22 = vld [vmem:[%s3815_s0 + $0x80] sm:$0xff] }
   0x6   :  { %302 = vmatprep.subr.bf16.mxu0 %v249_v9  ;;  %v245_v21 = vpack.c.bf16 %v171_v19, %v169_v18  ;;  %v170_v23 = vld [vmem:[%s3815_s0 + $0x90] sm:$0xff]  ;;  %v165_v24 = vld [vmem:[%s3815_s0 + $0x68] sm:$0xff]  ;;  %v167_v25 = vld [vmem:[%s3815_s0 + $0x78] sm:$0xff] }
   0x7   :  { %v244_v26 = vpack.c.bf16 %v170_v23, %v168_v22  ;;  %v164_v27 = vld [vmem:[%s3815_s0 + $0x60] sm:$0xff]  ;;  %v166_v28 = vld [vmem:[%s3815_s0 + $0x70] sm:$0xff]  ;;  %v243_v29 = vpack.c.bf16 %v167_v25, %v165_v24  ;;  %v161_v30 = vld [vmem:[%s3815_s0 + $0x48] sm:$0xff] }
   0x8   :  { %v233_v31 = vld [vmem:[%s3815_s0 + $0x288] sm:$0xff]  ;;  %v235_v32 = vld [vmem:[%s3815_s0 + $0x298] sm:$0xff]  ;;  %v232_v35 = vld [vmem:[%s3815_s0 + $0x280] sm:$0xff]  ;;  %v242_v38 = vpack.c.bf16 %v166_v28, %v164_v27 }
   0x9   :  { %303 = vmatpush1.bf16.msra.mxu0 %v248_v14  ;;  %v163_v33 = vld [vmem:[%s3815_s0 + $0x58] sm:$0xff]  ;;  %v277_v34 = vpack.c.bf16 %v235_v32, %v233_v31  ;;  %v234_v36 = vld [vmem:[%s3815_s0 + $0x290] sm:$0xff]  ;;  %v229_v39 = vld [vmem:[%s3815_s0 + $0x268] sm:$0xff] }
   0xa   :  { %304 = vmatprep.subr.bf16.mxu0 %v247_v15  ;;  %v276_v37 = vpack.c.bf16 %v234_v36, %v232_v35  ;;  %v231_v40 = vld [vmem:[%s3815_s0 + $0x278] sm:$0xff]  ;;  %v228_v41 = vld [vmem:[%s3815_s0 + $0x260] sm:$0xff]  ;;  %v241_v42 = vpack.c.bf16 %v163_v33, %v161_v30  ;;  %v162_v44 = vld [vmem:[%s3815_s0 + $0x50] sm:$0xff] }
   0xb   :  { %409 = vmatprep.subr.bf16.mxu1 %v277_v34  ;;  %v160_v43 = vld [vmem:[%s3815_s0 + $0x40] sm:$0xff]  ;;  %v275_v45 = vpack.c.bf16 %v231_v40, %v229_v39  ;;  %v230_v46 = vld [vmem:[%s3815_s0 + $0x270] sm:$0xff]  ;;  %v157_v47 = vld [vmem:[%s3815_s0 + $0x28] sm:$0xff] }
   0xc   :  { %410 = vmatpush1.bf16.msra.mxu1 %v276_v37  ;;  %v159_v48 = vld [vmem:[%s3815_s0 + $0x38] sm:$0xff]  ;;  %v274_v49 = vpack.c.bf16 %v230_v46, %v228_v41  ;;  %v225_v50 = vld [vmem:[%s3815_s0 + $0x248] sm:$0xff]  ;;  %v224_v52 = vld [vmem:[%s3815_s0 + $0x240] sm:$0xff]  ;;  %v240_v54 = vpack.c.bf16 %v162_v44, %v160_v43 }
   0xd   :  { %305 = vmatpush1.bf16.msra.mxu0 %v246_v20  ;;  %411 = vmatprep.subr.bf16.mxu1 %v275_v45  ;;  %v227_v51 = vld [vmem:[%s3815_s0 + $0x258] sm:$0xff]  ;;  %v226_v53 = vld [vmem:[%s3815_s0 + $0x250] sm:$0xff]  ;;  %v156_v55 = vld [vmem:[%s3815_s0 + $0x20] sm:$0xff]  ;;  %v239_v58 = vpack.c.bf16 %v159_v48, %v157_v47 }
   0xe   :  { %306 = vmatprep.subr.bf16.mxu0 %v245_v21  ;;  %v158_v56 = vld [vmem:[%s3815_s0 + $0x30] sm:$0xff]  ;;  %v273_v57 = vpack.c.bf16 %v227_v51, %v225_v50  ;;  %v153_v59 = vld [vmem:[%s3815_s0 + $0x8] sm:$0xff]  ;;  %v272_v60 = vpack.c.bf16 %v226_v53, %v224_v52  ;;  %v223_v62 = vld [vmem:[%s3815_s0 + $0x238] sm:$0xff]  ;;  %v74_v51 = vlaneseq }
   0xf   :  { %v221_v61 = vld [vmem:[%s3815_s0 + $0x228] sm:$0xff]  ;;  %v155_v63 = vld [vmem:[%s3815_s0 + $0x18] sm:$0xff]  ;;  %v220_v1 = vld [vmem:[%s3815_s0 + $0x220] sm:$0xff]  ;;  %v238_v4 = vpack.c.bf16 %v158_v56, %v156_v55 }
  0x10   :  { %412 = vmatpush1.bf16.msra.mxu1 %v274_v49  ;;  %v271_v0 = vpack.c.bf16 %v223_v62, %v221_v61  ;;  %v222_v2 = vld [vmem:[%s3815_s0 + $0x230] sm:$0xff]  ;;  %v152_v5 = vld [vmem:[%s3815_s0] sm:$0xff]  ;;  %v217_v6 = vld [vmem:[%s3815_s0 + $0x208] sm:$0xff]  ;;  %v237_v8 = vpack.c.bf16 %v155_v63, %v153_v59 }
  0x11   :  { %307 = vmatpush1.bf16.msra.mxu0 %v244_v26  ;;  %413 = vmatprep.subr.bf16.mxu1 %v273_v57  ;;  %v219_v7 = vld [vmem:[%s3815_s0 + $0x218] sm:$0xff]  ;;  %v154_v9 = vld [vmem:[%s3815_s0 + $0x10] sm:$0xff]  ;;  %v213_v10 = vld [vmem:[%s3815_s0 + $0x1e8] sm:$0xff]  ;;  %v270_v12 = vpack.c.bf16 %v222_v2, %v220_v1 }
  0x12   :  { %308 = vmatprep.subr.bf16.mxu0 %v243_v29  ;;  %v215_v11 = vld [vmem:[%s3815_s0 + $0x1f8] sm:$0xff]  ;;  %v269_v13 = vpack.c.bf16 %v219_v7, %v217_v6  ;;  %v216_v14 = vld [vmem:[%s3815_s0 + $0x200] sm:$0xff]  ;;  %v218_v15 = vld [vmem:[%s3815_s0 + $0x210] sm:$0xff]  ;;  %v236_v18 = vpack.c.bf16 %v154_v9, %v152_v5 }
  0x13   :  { %v24_v16 = vld [vmem:[%s3816_s1] sm:$0x7]  ;;  %v267_v19 = vpack.c.bf16 %v215_v11, %v213_v10  ;;  %v214_v21 = vld [vmem:[%s3815_s0 + $0x1f0] sm:$0xff]  ;;  %v268_v22 = vpack.c.bf16 %v218_v15, %v216_v14  ;;  %v209_v23 = vld [vmem:[%s3815_s0 + $0x1c8] sm:$0xff] }
  0x14   :  { %414 = vmatpush1.bf16.msra.mxu1 %v272_v60  ;;  %v1889_v17 = vmul.f32 -1.442695, %v24_v16  ;;  %v212_v20 = vld [vmem:[%s3815_s0 + $0x1e0] sm:$0xff]  ;;  %v211_v24 = vld [vmem:[%s3815_s0 + $0x1d8] sm:$0xff]  ;;  %v210_v28 = vld [vmem:[%s3815_s0 + $0x1d0] sm:$0xff] }
  0x15   :  { %309 = vmatpush1.bf16.msra.mxu0 %v242_v38  ;;  %415 = vmatprep.subr.bf16.mxu1 %v271_v0  ;;  %v266_v25 = vpack.c.bf16 %v214_v21, %v212_v20  ;;  %v265_v26 = vpack.c.bf16 %v211_v24, %v209_v23  ;;  %v208_v27 = vld [vmem:[%s3815_s0 + $0x1c0] sm:$0xff]  ;;  %v205_v29 = vld [vmem:[%s3815_s0 + $0x1a8] sm:$0xff]  ;;  %v207_v30 = vld [vmem:[%s3815_s0 + $0x1b8] sm:$0xff] }
  0x16   :  { %310 = vmatprep.subr.bf16.mxu0 %v241_v42  ;;  %1956 = vpow2.f32 %v1889_v17  ;;  %v264_v31 = vpack.c.bf16 %v210_v28, %v208_v27  ;;  %v263_v32 = vpack.c.bf16 %v207_v30, %v205_v29  ;;  %v204_v33 = vld [vmem:[%s3815_s0 + $0x1a0] sm:$0xff]  ;;  %v206_v34 = vld [vmem:[%s3815_s0 + $0x1b0] sm:$0xff]  ;;  %v201_v35 = vld [vmem:[%s3815_s0 + $0x188] sm:$0xff] }
  0x17   :  { %v203_v36 = vld [vmem:[%s3815_s0 + $0x198] sm:$0xff]  ;;  %v262_v37 = vpack.c.bf16 %v206_v34, %v204_v33  ;;  %v200_v39 = vld [vmem:[%s3815_s0 + $0x180] sm:$0xff]  ;;  %v202_v40 = vld [vmem:[%s3815_s0 + $0x190] sm:$0xff] }
  0x18   :  { %416 = vmatpush1.bf16.msra.mxu1 %v270_v12  ;;  %v261_v38 = vpack.c.bf16 %v203_v36, %v201_v35  ;;  %v197_v42 = vld [vmem:[%s3815_s0 + $0x168] sm:$0xff]  ;;  %v199_v43 = vld [vmem:[%s3815_s0 + $0x178] sm:$0xff]  ;;  %v260_v45 = vpack.c.bf16 %v202_v40, %v200_v39  ;;  %v196_v47 = vld [vmem:[%s3815_s0 + $0x160] sm:$0xff] }
  0x19   :  { %311 = vmatpush1.bf16.msra.mxu0 %v240_v54  ;;  %417 = vmatprep.subr.bf16.mxu1 %v269_v13  ;;  %v259_v46 = vpack.c.bf16 %v199_v43, %v197_v42  ;;  %v198_v48 = vld [vmem:[%s3815_s0 + $0x170] sm:$0xff]  ;;  %v193_v49 = vld [vmem:[%s3815_s0 + $0x148] sm:$0xff]  ;;  %v195_v50 = vld [vmem:[%s3815_s0 + $0x158] sm:$0xff] }
  0x1a   :  { %312 = vmatprep.subr.bf16.mxu0 %v239_v58  ;;  %v258_v52 = vpack.c.bf16 %v198_v48, %v196_v47  ;;  %v257_v53 = vpack.c.bf16 %v195_v50, %v193_v49  ;;  %v192_v54 = vld [vmem:[%s3815_s0 + $0x140] sm:$0xff]  ;;  %v194_v55 = vld [vmem:[%s3815_s0 + $0x150] sm:$0xff]  ;;  %v189_v56 = vld [vmem:[%s3815_s0 + $0x128] sm:$0xff]  ;;  %v75_v58 = vshrl.u32 %v74_v51, 7 }
  0x1b   :  { %v191_v57 = vld [vmem:[%s3815_s0 + $0x138] sm:$0xff]  ;;  %v256_v59 = vpack.c.bf16 %v194_v55, %v192_v54  ;;  %v188_v61 = vld [vmem:[%s3815_s0 + $0x120] sm:$0xff]  ;;  %v190_v62 = vld [vmem:[%s3815_s0 + $0x130] sm:$0xff] }
  0x1c   :  { %418 = vmatpush1.bf16.msra.mxu1 %v268_v22  ;;  %v255_v60 = vpack.c.bf16 %v191_v57, %v189_v56  ;;  %v185_v63 = vld [vmem:[%s3815_s0 + $0x108] sm:$0xff]  ;;  %v187_v0 = vld [vmem:[%s3815_s0 + $0x118] sm:$0xff]  ;;  %v84_v1 = vsub.s32 2, %v75_v58  ;;  %v80_v2 = vsub.s32 1, %v75_v58  ;;  %v254_v5 = vpack.c.bf16 %v190_v62, %v188_v61  ;;  %v33_v6 = vld [vmem:[%s3817_s2 + $0x10] sm:$0xff] }
  0x1d   :  { %313 = vmatpush1.bf16.msra.mxu0 %v238_v4  ;;  %v76_v4 = vsub.s32 0, %v75_v58  ;;  %v253_v7 = vpack.c.bf16 %v187_v0, %v185_v63  ;;  %v186_v9 = vld [vmem:[%s3815_s0 + $0x110] sm:$0xff]  ;;  %v36_v11 = vld [vmem:[%s3817_s2 + $0x28] sm:$0xff]  ;;  %v35_v13 = vld [vmem:[%s3817_s2 + $0x20] sm:$0xff] }
  0x1e   :  { %314 = vmatprep.subr.bf16.mxu0 %v237_v8  ;;  %v184_v8 = vld [vmem:[%s3815_s0 + $0x100] sm:$0xff]  ;;  %v32_v12 = vld [vmem:[%s3817_s2 + $0x8] sm:$0xff]  ;;  %v34_v17 = vld [vmem:[%s3817_s2 + $0x18] sm:$0xff] }
  0x1f   :  { %v31_v16 = vld [vmem:[%s3817_s2] sm:$0xff]  ;;  %v38_v20 = vld [vmem:[%s3817_s2 + $0x38] sm:$0xff]  ;;  %v41_v21 = vld [vmem:[%s3817_s2 + $0x50] sm:$0xff] }
  0x20   :  { %v39_v28 = vld [vmem:[%s3817_s2 + $0x40] sm:$0xff]  ;;  %v42_v29 = vld [vmem:[%s3817_s2 + $0x58] sm:$0xff]  ;;  %v37_v35 = vld [vmem:[%s3817_s2 + $0x30] sm:$0xff] }
  0x21   :  { %315 = vmatpush1.bf16.msra.mxu0 %v236_v18  ;;  %v40_v36 = vld [vmem:[%s3817_s2 + $0x48] sm:$0xff]  ;;  %v45_v47 = vld [vmem:[%s3817_s2 + $0x70] sm:$0xff]  ;;  %v43_v51 = vld [vmem:[%s3817_s2 + $0x60] sm:$0xff] }
  0x22   :  { %316 = vmatprep.subr.bf16.mxu0 %v267_v19  ;;  %v252_v19 = vpack.c.bf16 %v186_v9, %v184_v8  ;;  %v44_v40 = vld [vmem:[%s3817_s2 + $0x68] sm:$0xff]  ;;  %v50_v55 = vld [vmem:[%s3817_s2 + $0x98] sm:$0xff]  ;;  %v53_v56 = vld [vmem:[%s3817_s2 + $0xb0] sm:$0xff] }
  0x23   :  { %v1957_v41 = vpop.eup %1956  ;;  %v48_v48 = vld [vmem:[%s3817_s2 + $0x88] sm:$0xff]  ;;  %v51_v62 = vld [vmem:[%s3817_s2 + $0xa0] sm:$0xff]  ;;  %v54_v63 = vld [vmem:[%s3817_s2 + $0xb8] sm:$0xff] }
  0x24   :  { %v28_v44 = vadd.f32 1.0, %v1957_v41  ;;  %v47_v41 = vld [vmem:[%s3817_s2 + $0x80] sm:$0xff] }
  0x25   :  { %317 = vmatpush2.bf16.msra.mxu0 %v266_v25  ;;  %v59_v8 = vld [vmem:[%s3817_s2 + $0xe0] sm:$0xff] }
  0x26   :  { %318 = vmatprep.subr.bf16.mxu0 %v265_v26  ;;  %1958 = vrcp.f32 %v28_v44 }
  0x29   :  { %319 = vmatpush2.bf16.msra.mxu0 %v264_v31 }
  0x2a   :  { %320 = vmatprep.subr.bf16.mxu0 %v263_v32 }
  0x2d   :  { %321 = vmatpush2.bf16.msra.mxu0 %v262_v37 }
  0x2e   :  { %322 = vmatprep.subr.bf16.mxu0 %v261_v38 }
  0x31   :  { %323 = vmatpush2.bf16.msra.mxu0 %v260_v45 }
  0x32   :  { %324 = vmatprep.subr.bf16.mxu0 %v259_v46 }
  0x33   :  { %v1959_v10 = vpop.eup %1958 }
  0x34   :  { %v2294_v14 = vrot.slane %v1959_v10, %v84_v1  ;;  %v2296_v15 = vrot.slane %v1959_v10, %v80_v2  ;;  %v2304_v18 = vrot.slane %v1959_v10, %v76_v4  ;;  %v49_v2 = vld [vmem:[%s3817_s2 + $0x90] sm:$0xff]  ;;  %v52_v4 = vld [vmem:[%s3817_s2 + $0xa8] sm:$0xff] }
  0x35   :  { %325 = vmatpush2.bf16.msra.mxu0 %v258_v52  ;;  %v46_v52 = vld [vmem:[%s3817_s2 + $0x78] sm:$0xff] }
  0x36   :  { %326 = vmatprep.subr.bf16.mxu0 %v257_v53  ;;  %v91_v22 = vmul.f32 %v2294_v14, %v33_v6  ;;  %v94_v23 = vmul.f32 %v2294_v14, %v36_v11  ;;  %v90_v24 = vmul.f32 %v2296_v15, %v32_v12  ;;  %v93_v25 = vmul.f32 %v2296_v15, %v35_v13 }
  0x37   :  { %v89_v26 = vmul.f32 %v2304_v18, %v31_v16  ;;  %v92_v27 = vmul.f32 %v2304_v18, %v34_v17  ;;  %v96_v32 = vmul.f32 %v2296_v15, %v38_v20  ;;  %v99_v33 = vmul.f32 %v2296_v15, %v41_v21  ;;  %v57_v16 = vld [vmem:[%s3817_s2 + $0xd0] sm:$0xff]  ;;  %v60_v17 = vld [vmem:[%s3817_s2 + $0xe8] sm:$0xff]  ;;  %v55_v21 = vld [vmem:[%s3817_s2 + $0xc0] sm:$0xff] }
  0x38   :  { %v133_v30 = vpack.c.bf16 %v94_v23, %v91_v22  ;;  %v132_v31 = vpack.c.bf16 %v93_v25, %v90_v24  ;;  %v97_v37 = vmul.f32 %v2294_v14, %v39_v28  ;;  %v100_v38 = vmul.f32 %v2294_v14, %v42_v29  ;;  %v58_v22 = vld [vmem:[%s3817_s2 + $0xd8] sm:$0xff] }
  0x39   :  { %327 = vmatpush2.bf16.msra.mxu0 %v256_v59  ;;  %v131_v34 = vpack.c.bf16 %v92_v27, %v89_v26  ;;  %v135_v39 = vpack.c.bf16 %v99_v33, %v96_v32  ;;  %v95_v42 = vmul.f32 %v2304_v18, %v37_v35  ;;  %v98_v43 = vmul.f32 %v2304_v18, %v40_v36  ;;  %v62_v25 = vld [vmem:[%s3817_s2 + $0xf8] sm:$0xff]  ;;  %v65_v26 = vld [vmem:[%s3817_s2 + $0x110] sm:$0xff]  ;;  %v63_v32 = vld [vmem:[%s3817_s2 + $0x100] sm:$0xff] }
  0x3a   :  { %328 = vmatprep.subr.bf16.mxu0 %v255_v60  ;;  %1890 = vmatmul.mubr.msk.bf16.vlgmr.msra.gmra.mxu1 %vm278_vm0, %v133_v30  ;;  %v102_v44 = vmul.f32 %v2296_v15, %v44_v40  ;;  %v105_v45 = vmul.f32 %v2296_v15, %v47_v41  ;;  %v136_v46 = vpack.c.bf16 %v100_v38, %v97_v37  ;;  %v66_v33 = vld [vmem:[%s3817_s2 + $0x118] sm:$0xff]  ;;  %v61_v36 = vld [vmem:[%s3817_s2 + $0xf0] sm:$0xff]  ;;  %v64_v37 = vld [vmem:[%s3817_s2 + $0x108] sm:$0xff] }
  0x3b   :  { %332 = vmatprep.mubr.bf16.mxu0 %v132_v31  ;;  %445 = vmatprep.mubr.bf16.mxu1 %v1988_v3  ;;  %v134_v49 = vpack.c.bf16 %v98_v43, %v95_v42  ;;  %v103_v53 = vmul.f32 %v2294_v14, %v45_v47  ;;  %v106_v54 = vmul.f32 %v2294_v14, %v48_v48  ;;  %v68_v40 = vld [vmem:[%s3817_s2 + $0x128] sm:$0xff]  ;;  %v71_v41 = vld [vmem:[%s3817_s2 + $0x140] sm:$0xff]  ;;  %v69_v47 = vld [vmem:[%s3817_s2 + $0x130] sm:$0xff] }
  0x3c   :  { %v138_v50 = vpack.c.bf16 %v105_v45, %v102_v44  ;;  %v101_v57 = vmul.f32 %v2304_v18, %v43_v51  ;;  %v104_v58 = vmul.f32 %v2304_v18, %v46_v52  ;;  %v108_v59 = vmul.f32 %v2296_v15, %v50_v55  ;;  %v72_v48 = vld [vmem:[%s3817_s2 + $0x148] sm:$0xff]  ;;  %v67_v51 = vld [vmem:[%s3817_s2 + $0x120] sm:$0xff]  ;;  %v70_v52 = vld [vmem:[%s3817_s2 + $0x138] sm:$0xff] }
  0x3d   :  { %329 = vmatpush2.bf16.msra.mxu0 %v254_v5  ;;  %v111_v60 = vmul.f32 %v2296_v15, %v53_v56  ;;  %v139_v61 = vpack.c.bf16 %v106_v54, %v103_v53  ;;  %v109_v5 = vmul.f32 %v2294_v14, %v51_v62  ;;  %v112_v6 = vmul.f32 %v2294_v14, %v54_v63 }
  0x3e   :  { %330 = vmatprep.subr.bf16.mxu0 %v253_v7  ;;  %v137_v0 = vpack.c.bf16 %v104_v58, %v101_v57  ;;  %v56_v7 = vld [vmem:[%s3817_s2 + $0xc8] sm:$0xff]  ;;  %v107_v9 = vmul.f32 %v2304_v18, %v49_v2  ;;  %v110_v10 = vmul.f32 %v2304_v18, %v52_v4  ;;  %v117_v12 = vmul.f32 %v2296_v15, %v59_v8 }
  0x3f   :  { %v141_v1 = vpack.c.bf16 %v111_v60, %v108_v59  ;;  %v114_v11 = vmul.f32 %v2296_v15, %v56_v7  ;;  %v142_v13 = vpack.c.bf16 %v112_v6, %v109_v5  ;;  %v115_v23 = vmul.f32 %v2294_v14, %v57_v16 }
  0x40   :  { %v118_v24 = vmul.f32 %v2294_v14, %v60_v17  ;;  %v113_v27 = vmul.f32 %v2304_v18, %v55_v21  ;;  %v116_v28 = vmul.f32 %v2304_v18, %v58_v22  ;;  %v120_v29 = vmul.f32 %v2296_v15, %v62_v25 }
  0x41   :  { %331 = vmatpush2.bf16.msra.mxu0 %v252_v19  ;;  %v140_v19 = vpack.c.bf16 %v110_v10, %v107_v9  ;;  %v144_v20 = vpack.c.bf16 %v117_v12, %v114_v11  ;;  %v123_v30 = vmul.f32 %v2296_v15, %v65_v26  ;;  %v121_v38 = vmul.f32 %v2294_v14, %v63_v32 }
  0x42   :  { %1891 = vmatmul.mubr.msk.bf16.gmra.mxu1 %vm278_vm0, %v136_v46  ;;  %v145_v31 = vpack.c.bf16 %v118_v24, %v115_v23  ;;  %v119_v42 = vmul.f32 %v2304_v18, %v61_v36  ;;  %v122_v43 = vmul.f32 %v2304_v18, %v64_v37  ;;  %v126_v44 = vmul.f32 %v2296_v15, %v68_v40 }
  0x43   :  { %455 = vmatprep.mubr.bf16.mxu1 %v1988_v3  ;;  %v147_v35 = vpack.c.bf16 %v123_v30, %v120_v29  ;;  %v129_v45 = vmul.f32 %v2296_v15, %v71_v41  ;;  %v127_v15 = vmul.f32 %v2294_v14, %v69_v47  ;;  %v130_v53 = vmul.f32 %v2294_v14, %v72_v48 }
  0x44   :  { %333 = vmatmul.mubr.bf16.vlgmr.msra.gmra.mxu0 %v131_v34  ;;  %v143_v34 = vpack.c.bf16 %v116_v28, %v113_v27  ;;  %v125_v54 = vmul.f32 %v2304_v18, %v67_v51  ;;  %v128_v55 = vmul.f32 %v2304_v18, %v70_v52 }
  0x45   :  { %342 = vmatprep.mubr.bf16.mxu0 %v135_v39  ;;  %v124_v39 = vmul.f32 %v2294_v14, %v66_v33  ;;  %v151_v56 = vpack.c.bf16 %v130_v53, %v127_v15 }
  0x46   :  { %v149_v57 = vpack.c.bf16 %v128_v55, %v125_v54 }
  0x47   :  { %v148_v46 = vpack.c.bf16 %v124_v39, %v121_v38 }
  0x4a   :  { %1892 = vmatmul.mubr.msk.bf16.gmra.mxu1 %vm278_vm0, %v139_v61 }
  0x4b   :  { %465 = vmatprep.mubr.bf16.mxu1 %v1988_v3 }
  0x4c   :  { %343 = vmatmul.mubr.bf16.gmra.mxu0 %v134_v49  ;;  %v146_v49 = vpack.c.bf16 %v122_v43, %v119_v42 }
  0x4d   :  { %352 = vmatprep.mubr.bf16.mxu0 %v138_v50  ;;  %v150_v50 = vpack.c.bf16 %v129_v45, %v126_v44 }
  0x52   :  { %1893 = vmatmul.mubr.msk.bf16.gmra.mxu1 %vm278_vm0, %v142_v13 }
  0x53   :  { %475 = vmatprep.mubr.bf16.mxu1 %v1988_v3 }
  0x54   :  { %353 = vmatmul.mubr.bf16.gmra.mxu0 %v137_v0 }
  0x55   :  { %362 = vmatprep.mubr.bf16.mxu0 %v141_v1 }
  0x5a   :  { %1894 = vmatmul.mubr.msk.bf16.gmra.mxu1 %vm278_vm0, %v145_v31 }
  0x5b   :  { %485 = vmatprep.mubr.bf16.mxu1 %v1988_v3 }
  0x5c   :  { %363 = vmatmul.mubr.bf16.gmra.mxu0 %v140_v19 }
  0x5d   :  { %372 = vmatprep.mubr.bf16.mxu0 %v144_v20 }
  0x62   :  { %1895 = vmatmul.mubr.msk.bf16.gmra.mxu1 %vm278_vm0, %v148_v46 }
  0x63   :  { %495 = vmatprep.mubr.bf16.mxu1 %v1988_v3 }
  0x64   :  { %373 = vmatmul.mubr.bf16.gmra.mxu0 %v143_v34 }
  0x65   :  { %382 = vmatprep.mubr.bf16.mxu0 %v147_v35 }
  0x6a   :  { %1896 = vmatmul.mubr.msk.bf16.gmra.mxu1 %vm278_vm0, %v151_v56 }
  0x6b   :  { %1476 = vmatprep.mubr.bf16.mxu1 %v1988_v3 }
  0x6c   :  { %383 = vmatmul.mubr.bf16.gmra.mxu0 %v146_v49 }
  0x6d   :  { %392 = vmatprep.mubr.bf16.mxu0 %v150_v50 }
  0x74   :  { %393 = vmatmul.mubr.bf16.gmra.mxu0 %v149_v57 }
  0x75   :  { %1296 = vmatprep.mubr.bf16.mxu0 %v1988_v3 }
  0xfa   :  { %v437_v58 = vpop.f32.mrf.mxu1 }
  0xfc   :  { %v439_v59 = vpop.f32.mrf.mxu1 }
  0xfe   :  { %v441_v61 = vpop.f32.mrf.mxu1 }
 0x100   :  { %v2475_v18 = vpop.f32.mrf.mxu1 }
 0x102   :  { %v2479_v2 = vpop.f32.mrf.mxu1 }
 0x104   :  { %v334_v14 = vpop.f32.mrf.mxu0  ;;  %v2483_v5 = vpop.f32.mrf.mxu1 }
 0x105   :  { %v2471_v60 = vadd.f32 %v437_v58, %v334_v14 }
 0x106   :  { %v336_v62 = vpop.f32.mrf.mxu0  ;;  %v2487_v7 = vpop.f32.mrf.mxu1 }
 0x107   :  { %v2473_v63 = vadd.f32 %v439_v59, %v336_v62 }
 0x108   :  { %v338_v0 = vpop.f32.mrf.mxu0  ;;  %v2491_v9 = vpop.f32.mrf.mxu1 }
 0x109   :  { %v2477_v1 = vadd.f32 %v441_v61, %v338_v0 }
 0x10a   :  { %v2481_v4 = vpop.f32.mrf.mxu0  ;;  %v2495_v11 = vpop.f32.mrf.mxu1 }
 0x10c   :  { %v2485_v6 = vpop.f32.mrf.mxu0  ;;  %v2499_v13 = vpop.f32.mrf.mxu1 }
 0x10e   :  { %v2489_v8 = vpop.f32.mrf.mxu0  ;;  %v2503_v17 = vpop.f32.mrf.mxu1 }
 0x110   :  { %v2493_v10 = vpop.f32.mrf.mxu0  ;;  %v2507_v20 = vpop.f32.mrf.mxu1 }
 0x112   :  { %v2497_v12 = vpop.f32.mrf.mxu0  ;;  %v467_v22 = vpop.f32.mrf.mxu1 }
 0x114   :  { %v2501_v16 = vpop.f32.mrf.mxu0  ;;  %v469_v24 = vpop.f32.mrf.mxu1 }
 0x116   :  { %v2505_v19 = vpop.f32.mrf.mxu0  ;;  %v471_v26 = vpop.f32.mrf.mxu1 }
 0x118   :  { %v2509_v21 = vpop.f32.mrf.mxu0  ;;  %v473_v30 = vpop.f32.mrf.mxu1 }
 0x11a   :  { %v2511_v23 = vpop.f32.mrf.mxu0  ;;  %v477_v33 = vpop.f32.mrf.mxu1 }
 0x11c   :  { %v364_v25 = vpop.f32.mrf.mxu0  ;;  %v479_v38 = vpop.f32.mrf.mxu1 }
 0x11d   :  { %v2515_v29 = vadd.f32 %v467_v22, %v364_v25 }
 0x11e   :  { %v366_v27 = vpop.f32.mrf.mxu0  ;;  %v481_v41 = vpop.f32.mrf.mxu1 }
 0x11f   :  { %v2513_v28 = vadd.f32 %v469_v24, %v366_v27 }
 0x120   :  { %v368_v31 = vpop.f32.mrf.mxu0  ;;  %v483_v45 = vpop.f32.mrf.mxu1 }
 0x121   :  { %v531_v32 = vsel %vm506_vm1, %v2513_v28, 0.0  ;;  %v2522_v37 = vadd.f32 %v471_v26, %v368_v31 }
 0x122   :  { %v370_v34 = vpop.f32.mrf.mxu0  ;;  %v532_v35 = vadd.f32 %v531_v32, %v2515_v29  ;;  %v487_v50 = vpop.f32.mrf.mxu1 }
 0x123   :  { %v2520_v36 = vadd.f32 %v473_v30, %v370_v34 }
 0x124   :  { %533 = vadd.xlane.f32.xlu0 %v532_v35  ;;  %v374_v39 = vpop.f32.mrf.mxu0  ;;  %v489_v54 = vpop.f32.mrf.mxu1 }
 0x125   :  { %v535_v40 = vsel %vm506_vm1, %v2520_v36, 0.0  ;;  %v2529_v46 = vadd.f32 %v477_v33, %v374_v39 }
 0x126   :  { %v376_v42 = vpop.f32.mrf.mxu0  ;;  %v536_v43 = vadd.f32 %v535_v40, %v2522_v37  ;;  %v491_v14 = vpop.f32.mrf.mxu1 }
 0x127   :  { %v2527_v44 = vadd.f32 %v479_v38, %v376_v42  ;;  %v593_v57 = vmul.f32 %v2529_v46, %v2529_v46 }
 0x128   :  { %537 = vadd.xlane.f32.xlu1 %v536_v43  ;;  %v378_v47 = vpop.f32.mrf.mxu0  ;;  %v493_v25 = vpop.f32.mrf.mxu1 }
 0x129   :  { %v539_v48 = vsel %vm506_vm1, %v2527_v44, 0.0  ;;  %v594_v49 = vmul.f32 %v2527_v44, %v2527_v44  ;;  %v2539_v55 = vadd.f32 %v481_v41, %v378_v47 }
 0x12a   :  { %v380_v51 = vpop.f32.mrf.mxu0  ;;  %v540_v52 = vadd.f32 %v539_v48, %v2529_v46  ;;  %v497_v33 = vpop.f32.mrf.mxu1 }
 0x12b   :  { %v2536_v15 = vadd.f32 %v483_v45, %v380_v51  ;;  %v637_v53 = vsel %vm506_vm1, %v594_v49, 0.0  ;;  %v595_v30 = vmul.f32 %v2539_v55, %v2539_v55 }
 0x12c   :  { %541 = vadd.xlane.f32.xlu0 %v540_v52  ;;  %v384_v56 = vpop.f32.mrf.mxu0  ;;  %v638_v62 = vadd.f32 %v637_v53, %v593_v57  ;;  %v499_v41 = vpop.f32.mrf.mxu1 }
 0x12d   :  { %v543_v58 = vsel %vm506_vm1, %v2536_v15, 0.0  ;;  %v596_v59 = vmul.f32 %v2536_v15, %v2536_v15  ;;  %v2551_v26 = vadd.f32 %v487_v50, %v384_v56 }
 0x12e   :  { %v386_v61 = vpop.f32.mrf.mxu0  ;;  %v544_v0 = vadd.f32 %v543_v58, %v2539_v55  ;;  %v501_v49 = vpop.f32.mrf.mxu1 }
 0x12f   :  { %v2548_v22 = vadd.f32 %v489_v54, %v386_v61  ;;  %v641_v24 = vsel %vm506_vm1, %v596_v59, 0.0  ;;  %v597_v45 = vmul.f32 %v2551_v26, %v2551_v26 }
 0x130   :  { %639 = vadd.xlane.f32.xlu0 %v638_v62  ;;  %545 = vadd.xlane.f32.xlu1 %v544_v0  ;;  %v388_v27 = vpop.f32.mrf.mxu0  ;;  %v642_v35 = vadd.f32 %v641_v24, %v595_v30  ;;  %v503_v61 = vpop.f32.mrf.mxu1  ;;  %v592_v30 = vmul.f32 %v2520_v36, %v2520_v36 }
 0x131   :  { %v547_v31 = vsel %vm506_vm1, %v2548_v22, 0.0  ;;  %v598_v32 = vmul.f32 %v2548_v22, %v2548_v22  ;;  %v2563_v42 = vadd.f32 %v491_v14, %v388_v27 }
 0x132   :  { %v390_v34 = vpop.f32.mrf.mxu0  ;;  %v548_v38 = vadd.f32 %v547_v31, %v2551_v26  ;;  %v590_v31 = vmul.f32 %v2513_v28, %v2513_v28 }
 0x133   :  { %v2560_v39 = vadd.f32 %v493_v25, %v390_v34  ;;  %v645_v40 = vsel %vm506_vm1, %v598_v32, 0.0  ;;  %v599_v58 = vmul.f32 %v2563_v42, %v2563_v42 }
 0x134   :  { %643 = vadd.xlane.f32.xlu1 %v642_v35  ;;  %549 = vadd.xlane.f32.xlu0 %v548_v38  ;;  %v394_v43 = vpop.f32.mrf.mxu0  ;;  %v646_v51 = vadd.f32 %v645_v40, %v597_v45  ;;  %v2600_v40 = vadd.f32 %v2499_v13, %v2505_v19  ;;  %v629_v45 = vsel %vm506_vm1, %v590_v31, 0.0 }
 0x135   :  { %v551_v47 = vsel %vm506_vm1, %v2560_v39, 0.0  ;;  %v600_v48 = vmul.f32 %v2560_v39, %v2560_v39  ;;  %v2575_v56 = vadd.f32 %v497_v33, %v394_v43  ;;  %v633_v43 = vsel %vm506_vm1, %v592_v30, 0.0 }
 0x136   :  { %v396_v50 = vpop.f32.mrf.mxu0  ;;  %v552_v52 = vadd.f32 %v551_v47, %v2563_v42  ;;  %v591_v47 = vmul.f32 %v2522_v37, %v2522_v37  ;;  %v523_v19 = vsel %vm506_vm1, %v2600_v40, 0.0 }
 0x137   :  { %v2572_v53 = vadd.f32 %v499_v41, %v396_v50  ;;  %v649_v54 = vsel %vm506_vm1, %v600_v48, 0.0  ;;  %v601_v33 = vmul.f32 %v2575_v56, %v2575_v56  ;;  %v2604_v41 = vadd.f32 %v2507_v20, %v2511_v23 }
 0x138   :  { %647 = vadd.xlane.f32.xlu0 %v646_v51  ;;  %553 = vadd.xlane.f32.xlu1 %v552_v52  ;;  %v398_v57 = vpop.f32.mrf.mxu0  ;;  %v650_v0 = vadd.f32 %v649_v54, %v599_v58  ;;  %v589_v48 = vmul.f32 %v2515_v29, %v2515_v29  ;;  %v586_v23 = vmul.f32 %v2600_v40, %v2600_v40 }
 0x139   :  { %v555_v59 = vsel %vm506_vm1, %v2572_v53, 0.0  ;;  %v602_v14 = vmul.f32 %v2572_v53, %v2572_v53  ;;  %v2591_v32 = vadd.f32 %v501_v49, %v398_v57  ;;  %v634_v49 = vadd.f32 %v633_v43, %v591_v47 }
 0x13a   :  { %v400_v62 = vpop.f32.mrf.mxu0  ;;  %v556_v24 = vadd.f32 %v555_v59, %v2575_v56  ;;  %v630_v50 = vadd.f32 %v629_v45, %v589_v48  ;;  %v527_v13 = vsel %vm506_vm1, %v2604_v41, 0.0  ;;  %v2622_v51 = vadd.f32 %v2495_v11, %v2501_v16 }
 0x13b   :  { %v2584_v25 = vadd.f32 %v503_v61, %v400_v62  ;;  %v653_v27 = vsel %vm506_vm1, %v602_v14, 0.0  ;;  %v2626_v52 = vadd.f32 %v2503_v17, %v2509_v21  ;;  %v2632_v58 = vadd.f32 %v2483_v5, %v2489_v8 }
 0x13c   :  { %651 = vadd.xlane.f32.xlu1 %v650_v0  ;;  %557 = vadd.xlane.f32.xlu0 %v556_v24  ;;  %v654_v35 = vadd.f32 %v653_v27, %v601_v33  ;;  %v524_v57 = vadd.f32 %v523_v19, %v2622_v51  ;;  %v621_v14 = vsel %vm506_vm1, %v586_v23, 0.0  ;;  %v588_v11 = vmul.f32 %v2604_v41, %v2604_v41 }
 0x13d   :  { %v559_v34 = vsel %vm506_vm1, %v2584_v25, 0.0  ;;  %v604_v20 = vmul.f32 %v2584_v25, %v2584_v25  ;;  %v528_v54 = vadd.f32 %v527_v13, %v2626_v52  ;;  %v603_v16 = vmul.f32 %v2591_v32, %v2591_v32 }
 0x13e   :  { %v560_v38 = vadd.f32 %v559_v34, %v2591_v32  ;;  %v585_v17 = vmul.f32 %v2622_v51, %v2622_v51  ;;  %v2644_v5 = vadd.f32 %v2491_v9, %v2497_v12  ;;  %v625_v8 = vsel %vm506_vm1, %v588_v11, 0.0 }
 0x13f   :  { %v657_v59 = vsel %vm506_vm1, %v604_v20, 0.0  ;;  %v515_v62 = vsel %vm506_vm1, %v2632_v58, 0.0  ;;  %v582_v0 = vmul.f32 %v2632_v58, %v2632_v58  ;;  %v2653_v24 = vadd.f32 %v2479_v2, %v2485_v6 }
 0x140   :  { %655 = vadd.xlane.f32.xlu1 %v654_v35  ;;  %561 = vadd.xlane.f32.xlu0 %v560_v38  ;;  %v658_v21 = vadd.f32 %v657_v59, %v603_v16  ;;  %v622_v61 = vadd.f32 %v621_v14, %v585_v17  ;;  %v587_v27 = vmul.f32 %v2626_v52, %v2626_v52  ;;  %v519_v12 = vsel %vm506_vm1, %v2644_v5, 0.0 }
 0x141   :  { %v516_v9 = vadd.f32 %v515_v62, %v2653_v24  ;;  %v613_v31 = vsel %vm506_vm1, %v582_v0, 0.0  ;;  %v584_v33 = vmul.f32 %v2644_v5, %v2644_v5  ;;  %v2665_v2 = vadd.f32 %v2487_v7, %v2493_v10 }
 0x142   :  { %v626_v30 = vadd.f32 %v625_v8, %v587_v27  ;;  %v581_v6 = vmul.f32 %v2653_v24, %v2653_v24  ;;  %v2672_v38 = vadd.f32 %v2475_v18, %v2481_v4  ;;  %v507_v45 = vsel %vm506_vm1, %v2473_v63, 0.0 }
 0x143   :  { %v520_v34 = vadd.f32 %v519_v12, %v2665_v2  ;;  %v617_v43 = vsel %vm506_vm1, %v584_v33, 0.0  ;;  %v578_v7 = vmul.f32 %v2473_v63, %v2473_v63  ;;  %v583_v10 = vmul.f32 %v2665_v2, %v2665_v2 }
 0x144   :  { %635 = vadd.xlane.f32.xlu1 %v634_v49  ;;  %631 = vadd.xlane.f32.xlu0 %v630_v50  ;;  %v614_v35 = vadd.f32 %v613_v31, %v581_v6  ;;  %v508_v48 = vadd.f32 %v507_v45, %v2471_v60  ;;  %v511_v18 = vsel %vm506_vm1, %v2672_v38, 0.0  ;;  %v580_v49 = vmul.f32 %v2672_v38, %v2672_v38 }
 0x145   :  { %v618_v47 = vadd.f32 %v617_v43, %v583_v10  ;;  %v605_v4 = vsel %vm506_vm1, %v578_v7, 0.0  ;;  %v577_v50 = vmul.f32 %v2471_v60, %v2471_v60  ;;  %v512_v13 = vadd.f32 %v511_v18, %v2477_v1 }
 0x146   :  { %v609_v20 = vsel %vm506_vm1, %v580_v49, 0.0  ;;  %v579_v23 = vmul.f32 %v2477_v1, %v2477_v1 }
 0x147   :  { %v606_v19 = vadd.f32 %v605_v4, %v577_v50 }
 0x148   :  { %529 = vadd.xlane.f32.xlu1 %v528_v54  ;;  %525 = vadd.xlane.f32.xlu0 %v524_v57  ;;  %v610_v54 = vadd.f32 %v609_v20, %v579_v23 }
 0x14c   :  { %659 = vadd.xlane.f32.xlu1 %v658_v21  ;;  %623 = vadd.xlane.f32.xlu0 %v622_v61 }
 0x150   :  { %627 = vadd.xlane.f32.xlu1 %v626_v30  ;;  %517 = vadd.xlane.f32.xlu0 %v516_v9 }
 0x154   :  { %521 = vadd.xlane.f32.xlu1 %v520_v34  ;;  %615 = vadd.xlane.f32.xlu0 %v614_v35 }
 0x158   :  { %619 = vadd.xlane.f32.xlu1 %v618_v47  ;;  %509 = vadd.xlane.f32.xlu0 %v508_v48 }
 0x15c   :  { %513 = vadd.xlane.f32.xlu1 %v512_v13  ;;  %607 = vadd.xlane.f32.xlu0 %v606_v19 }
 0x160   :  { %611 = vadd.xlane.f32.xlu1 %v610_v54 }
 0x1ad   :  { %v534_v57 = vpop.xlane.xlu0 %533 }
 0x1ae   :  { %v2701_v34 = vmul.f32 0.0051020407, %v534_v57 }
 0x1b0   :  { %v681_v48 = vmul.f32 %v2701_v34, %v2701_v34 }
 0x1b1   :  { %v538_v59 = vpop.xlane.xlu1 %537 }
 0x1b2   :  { %v2703_v35 = vmul.f32 0.0051020407, %v538_v59 }
 0x1b4   :  { %v682_v18 = vmul.f32 %v2703_v35, %v2703_v35 }
 0x1b5   :  { %v542_v14 = vpop.xlane.xlu0 %541 }
 0x1b6   :  { %v2697_v12 = vmul.f32 0.0051020407, %v542_v14 }
 0x1b8   :  { %v683_v45 = vmul.f32 %v2697_v12, %v2697_v12 }
 0x1b9   :  { %v640_v11 = vpop.xlane.xlu0 %639  ;;  %v546_v16 = vpop.xlane.xlu1 %545 }
 0x1ba   :  { %v2693_v62 = vmul.f32 0.0051020407, %v546_v16  ;;  %v669_v43 = vmul.f32 0.0051020407, %v640_v11 }
 0x1bc   :  { %v684_v9 = vmul.f32 %v2693_v62, %v2693_v62  ;;  %v697_v50 = vsub.f32 %v669_v43, %v683_v45 }
 0x1bd   :  { %v644_v17 = vpop.xlane.xlu1 %643  ;;  %v550_v21 = vpop.xlane.xlu0 %549 }
 0x1be   :  { %v670_v0 = vmul.f32 0.0051020407, %v644_v17  ;;  %v725_v14 = vadd.f32 1e-05, %v697_v50  ;;  %v2715_v16 = vmul.f32 0.0051020407, %v550_v21 }
 0x1c0   :  { %v698_v31 = vsub.f32 %v670_v0, %v684_v9 }
 0x1c1   :  { %v648_v61 = vpop.xlane.xlu0 %647  ;;  %v554_v8 = vpop.xlane.xlu1 %553 }
 0x1c2   :  { %v726_v7 = vadd.f32 1e-05, %v698_v31  ;;  %v685_v31 = vmul.f32 %v2715_v16, %v2715_v16 }
 0x1c4   :  { %1960 = vrsqrt.f32 %v726_v7 }
 0x1c5   :  { %v652_v27 = vpop.xlane.xlu1 %651  ;;  %v558_v30 = vpop.xlane.xlu0 %557 }
 0x1c6   :  { %v2711_v13 = vmul.f32 0.0051020407, %v558_v30  ;;  %v671_v30 = vmul.f32 0.0051020407, %v648_v61 }
 0x1c8   :  { %v687_v11 = vmul.f32 %v2711_v13, %v2711_v13  ;;  %v699_v21 = vsub.f32 %v671_v30, %v685_v31 }
 0x1c9   :  { %v656_v33 = vpop.xlane.xlu1 %655  ;;  %v2699_v6 = vpop.xlane.xlu0 %561 }
 0x1ca   :  { %v673_v54 = vmul.f32 0.0051020407, %v656_v33  ;;  %v2721_v33 = vmul.f32 0.0051020407, %v554_v8  ;;  %v712_v8 = vld [vmem:[%s3818_s3 + $0x48] sm:$0xff] }
 0x1cc   :  { %v701_v0 = vsub.f32 %v673_v54, %v687_v11  ;;  %v709_v54 = vld [vmem:[%s3818_s3 + $0x30] sm:$0xff] }
 0x1cd   :  { %v636_v10 = vpop.xlane.xlu1 %635  ;;  %v632_v47 = vpop.xlane.xlu0 %631 }
 0x1ce   :  { %v668_v4 = vmul.f32 0.0051020407, %v636_v10  ;;  %v667_v49 = vmul.f32 0.0051020407, %v632_v47  ;;  %v729_v45 = vadd.f32 1e-05, %v701_v0 }
 0x1cf   :  { %v672_v47 = vmul.f32 0.0051020407, %v652_v27  ;;  %v710_v27 = vld [vmem:[%s3818_s3 + $0x38] sm:$0xff] }
 0x1d0   :  { %v696_v19 = vsub.f32 %v668_v4, %v682_v18  ;;  %v695_v20 = vsub.f32 %v667_v49, %v681_v48  ;;  %v686_v18 = vmul.f32 %v2721_v33, %v2721_v33 }
 0x1d1   :  { %v530_v23 = vpop.xlane.xlu1 %529  ;;  %v1961_v49 = vpop.eup %1960 }
 0x1d2   :  { %v724_v57 = vadd.f32 1e-05, %v696_v19  ;;  %v723_v59 = vadd.f32 1e-05, %v695_v20  ;;  %v2717_v9 = vmul.f32 0.0051020407, %v530_v23  ;;  %v526_v61 = vpop.xlane.xlu0 %525  ;;  %v700_v23 = vsub.f32 %v672_v47, %v686_v18 }
 0x1d3   :  { %v727_v20 = vadd.f32 1e-05, %v699_v21  ;;  %v765_v47 = vld [vmem:[%s3819_s4 + $0x30] sm:$0xff]  ;;  %v2747_v18 = vmul.f32 0.0051020407, %v2699_v6 }
 0x1d4   :  { %1962 = vrsqrt.f32 %v724_v57  ;;  %v680_v7 = vmul.f32 %v2717_v9, %v2717_v9 }
 0x1d5   :  { %1964 = vrsqrt.f32 %v723_v59  ;;  %v660_v17 = vpop.xlane.xlu1 %659  ;;  %v688_v6 = vmul.f32 %v2747_v18, %v2747_v18 }
 0x1d6   :  { %1966 = vrsqrt.f32 %v725_v14  ;;  %v754_v14 = vmul.f32 %v1961_v49, %v712_v8 }
 0x1d7   :  { %1968 = vrsqrt.f32 %v729_v45 }
 0x1d9   :  { %v628_v43 = vpop.xlane.xlu1 %627 }
 0x1da   :  { %v666_v10 = vmul.f32 0.0051020407, %v628_v43  ;;  %v728_v43 = vadd.f32 1e-05, %v700_v23  ;;  %v674_v23 = vmul.f32 0.0051020407, %v660_v17 }
 0x1dc   :  { %v694_v48 = vsub.f32 %v666_v10, %v680_v7  ;;  %v624_v10 = vpop.xlane.xlu0 %623 }
 0x1dd   :  { %v522_v4 = vpop.xlane.xlu1 %521 }
 0x1de   :  { %v722_v50 = vadd.f32 1e-05, %v694_v48  ;;  %v2727_v19 = vmul.f32 0.0051020407, %v522_v4  ;;  %v711_v48 = vld [vmem:[%s3818_s3 + $0x40] sm:$0xff] }
 0x1e0   :  { %1970 = vrsqrt.f32 %v722_v50  ;;  %v678_v0 = vmul.f32 %v2727_v19, %v2727_v19 }
 0x1e1   :  { %v1963_v57 = vpop.eup %1962  ;;  %v620_v59 = vpop.xlane.xlu1 %619  ;;  %1972 = vrsqrt.f32 %v727_v20  ;;  %v782_v20 = vmul.f32 %v754_v14, %v2693_v62 }
 0x1e2   :  { %v1965_v11 = vpop.eup %1964  ;;  %v664_v30 = vmul.f32 0.0051020407, %v620_v59  ;;  %v752_v31 = vmul.f32 %v1963_v57, %v710_v27  ;;  %1974 = vrsqrt.f32 %v728_v43  ;;  %v715_v43 = vld [vmem:[%s3818_s3 + $0x60] sm:$0xff] }
 0x1e3   :  { %v751_v45 = vmul.f32 %v1965_v11, %v709_v54  ;;  %v1967_v7 = vpop.eup %1966  ;;  %v768_v54 = vld [vmem:[%s3819_s4 + $0x48] sm:$0xff] }
 0x1e4   :  { %v692_v21 = vsub.f32 %v664_v30, %v678_v0  ;;  %838 = vperm.xlu0 %1955, %v752_v31   ;;  %v753_v57 = vmul.f32 %v1967_v7, %v711_v48  ;;  %v796_v0 = vsub.f32 %v768_v54, %v782_v20  ;;  %v1969_v17 = vpop.eup %1968  ;;  %v702_v30 = vsub.f32 %v674_v23, %v688_v6  ;;  %v767_v7 = vld [vmem:[%s3819_s4 + $0x40] sm:$0xff] }
 0x1e5   :  { %833 = vperm.xlu1 %1954, %v751_v45   ;;  %v514_v4 = vpop.xlane.xlu1 %513  ;;  %v779_v49 = vmul.f32 %v751_v45, %v2701_v34  ;;  %v518_v34 = vpop.xlane.xlu0 %517  ;;  %v2769_v48 = vmul.f32 %v1969_v17, %v715_v43  ;;  %v665_v20 = vmul.f32 0.0051020407, %v624_v10 }
 0x1e6   :  { %v720_v50 = vadd.f32 1e-05, %v692_v21  ;;  %v2750_v8 = vmul.f32 0.0051020407, %v514_v4  ;;  %v2767_v21 = vmul.f32 0.0051020407, %v526_v61  ;;  %v780_v4 = vmul.f32 %v752_v31, %v2703_v35 }
 0x1e7   :  { %v793_v27 = vsub.f32 %v765_v47, %v779_v49  ;;  %v713_v35 = vld [vmem:[%s3818_s3 + $0x50] sm:$0xff] }
 0x1e8   :  { %848 = vperm.xlu0 %1955, %v754_v14   ;;  %1976 = vrsqrt.f32 %v720_v50  ;;  %v676_v11 = vmul.f32 %v2750_v8, %v2750_v8  ;;  %v781_v14 = vmul.f32 %v753_v57, %v2697_v12  ;;  %v730_v50 = vadd.f32 1e-05, %v702_v30  ;;  %v766_v12 = vld [vmem:[%s3819_s4 + $0x38] sm:$0xff] }
 0x1e9   :  { %931 = vperm.xlu1 %1954, %v793_v27   ;;  %v612_v59 = vpop.xlane.xlu1 %611  ;;  %v708_v27 = vld [vmem:[%s3818_s3 + $0x28] sm:$0xff]  ;;  %v616_v54 = vpop.xlane.xlu0 %615  ;;  %v679_v31 = vmul.f32 %v2767_v21, %v2767_v21  ;;  %v794_v10 = vsub.f32 %v766_v12, %v780_v4 }
 0x1ea   :  { %v662_v62 = vmul.f32 0.0051020407, %v612_v59  ;;  %v795_v23 = vsub.f32 %v767_v7, %v781_v14 }
 0x1eb   :  { %v693_v6 = vsub.f32 %v665_v20, %v679_v31 }
 0x1ec   :  { %v690_v45 = vsub.f32 %v662_v62, %v676_v11  ;;  %946 = vperm.xlu0 %1955, %v796_v0   ;;  %v714_v62 = vld [vmem:[%s3818_s3 + $0x58] sm:$0xff]  ;;  %v2787_v0 = vmul.f32 0.0051020407, %v518_v34  ;;  %v769_v34 = vld [vmem:[%s3819_s4 + $0x50] sm:$0xff] }
 0x1ed   :  { %843 = vperm.xlu1 %1954, %v753_v57   ;;  %v1971_v49 = vpop.eup %1970  ;;  %v510_v17 = vpop.xlane.xlu0 %509  ;;  %v721_v14 = vadd.f32 1e-05, %v693_v6 }
 0x1ee   :  { %v718_v47 = vadd.f32 1e-05, %v690_v45  ;;  %v1973_v61 = vpop.eup %1972  ;;  %v750_v57 = vmul.f32 %v1971_v49, %v708_v27  ;;  %v663_v45 = vmul.f32 0.0051020407, %v616_v54  ;;  %v706_v49 = vld [vmem:[%s3818_s3 + $0x18] sm:$0xff] }
 0x1ef   :  { %v755_v59 = vmul.f32 %v1973_v61, %v713_v35  ;;  %v1975_v11 = vpop.eup %1974  ;;  %v770_v61 = vld [vmem:[%s3819_s4 + $0x58] sm:$0xff]  ;;  %v563_v54 = vmul.f32 0.0051020407, %v510_v17 }
 0x1f0   :  { %863 = vperm.xlu0 %1955, %v2769_v48   ;;  %1978 = vrsqrt.f32 %v718_v47  ;;  %v778_v30 = vmul.f32 %v750_v57, %v2717_v9  ;;  %v756_v7 = vmul.f32 %v1975_v11, %v714_v62  ;;  %v764_v47 = vld [vmem:[%s3819_s4 + $0x28] sm:$0xff]  ;;  %v677_v9 = vmul.f32 %v2787_v0, %v2787_v0 }
 0x1f1   :  { %941 = vperm.xlu1 %1954, %v795_v23   ;;  %1980 = vrsqrt.f32 %v730_v50  ;;  %v783_v4 = vmul.f32 %v755_v59, %v2715_v16  ;;  %v608_v27 = vpop.xlane.xlu0 %607  ;;  %v716_v62 = vld [vmem:[%s3818_s3 + $0x68] sm:$0xff]  ;;  %v675_v17 = vmul.f32 %v563_v54, %v563_v54 }
 0x1f2   :  { %v792_v50 = vsub.f32 %v764_v47, %v778_v30  ;;  %1982 = vrsqrt.f32 %v721_v14  ;;  %v691_v23 = vsub.f32 %v663_v45, %v677_v9  ;;  %v784_v16 = vmul.f32 %v756_v7, %v2721_v33  ;;  %v704_v33 = vld [vmem:[%s3818_s3 + $0x8] sm:$0xff] }
 0x1f3   :  { %v797_v12 = vsub.f32 %v769_v34, %v783_v4  ;;  %v785_v45 = vmul.f32 %v2769_v48, %v2711_v13  ;;  %v760_v34 = vld [vmem:[%s3819_s4 + $0x8] sm:$0xff]  ;;  %v707_v48 = vld [vmem:[%s3818_s3 + $0x20] sm:$0xff] }
 0x1f4   :  { %936 = vperm.xlu0 %1955, %v794_v10   ;;  %v719_v10 = vadd.f32 1e-05, %v691_v23  ;;  %v798_v6 = vsub.f32 %v770_v61, %v784_v16  ;;  %v772_v13 = vld [vmem:[%s3819_s4 + $0x68] sm:$0xff]  ;;  %v763_v16 = vld [vmem:[%s3819_s4 + $0x20] sm:$0xff] }
 0x1f5   :  { %853 = vperm.xlu1 %1954, %v755_v59   ;;  %v1977_v43 = vpop.eup %1976  ;;  %v762_v59 = vld [vmem:[%s3819_s4 + $0x18] sm:$0xff] }
 0x1f6   :  { %v748_v20 = vmul.f32 %v1977_v43, %v706_v49  ;;  %1984 = vrsqrt.f32 %v719_v10 }
 0x1f8   :  { %828 = vperm.xlu0 %1955, %v750_v57   ;;  %v776_v35 = vmul.f32 %v748_v20, %v2727_v19  ;;  %v661_v57 = vmul.f32 0.0051020407, %v608_v27  ;;  %v705_v27 = vld [vmem:[%s3818_s3 + $0x10] sm:$0xff] }
 0x1f9   :  { %858 = vperm.xlu1 %1954, %v756_v7   ;;  %v771_v7 = vld [vmem:[%s3819_s4 + $0x60] sm:$0xff] }
 0x1fa   :  { %v790_v19 = vsub.f32 %v762_v59, %v776_v35  ;;  %v689_v43 = vsub.f32 %v661_v57, %v675_v17  ;;  %v799_v49 = vsub.f32 %v771_v7, %v785_v45  ;;  %v703_v57 = vld [vmem:[%s3818_s3] sm:$0xff] }
 0x1fc   :  { %926 = vperm.xlu0 %1955, %v792_v50   ;;  %v717_v4 = vadd.f32 1e-05, %v689_v43 }
 0x1fd   :  { %951 = vperm.xlu1 %1954, %v797_v12   ;;  %v1979_v31 = vpop.eup %1978 }
 0x1fe   :  { %v1981_v11 = vpop.eup %1980  ;;  %v746_v30 = vmul.f32 %v1979_v31, %v704_v33  ;;  %1986 = vrsqrt.f32 %v717_v4 }
 0x1ff   :  { %v758_v14 = vmul.f32 %v1981_v11, %v716_v62  ;;  %v1983_v50 = vpop.eup %1982  ;;  %v759_v11 = vld [vmem:[%s3819_s4] sm:$0xff] }
 0x200   :  { %818 = vperm.xlu0 %1955, %v748_v20   ;;  %v774_v47 = vmul.f32 %v746_v30, %v2750_v8  ;;  %v749_v23 = vmul.f32 %v1983_v50, %v707_v48 }
 0x201   :  { %956 = vperm.xlu1 %1954, %v798_v6   ;;  %v786_v9 = vmul.f32 %v758_v14, %v2747_v18 }
 0x202   :  { %v788_v8 = vsub.f32 %v760_v34, %v774_v47  ;;  %v777_v12 = vmul.f32 %v749_v23, %v2767_v21  ;;  %v761_v21 = vld [vmem:[%s3819_s4 + $0x10] sm:$0xff] }
 0x203   :  { %v800_v20 = vsub.f32 %v772_v13, %v786_v9  ;;  %v1985_v18 = vpop.eup %1984 }
 0x204   :  { %916 = vperm.xlu0 %1955, %v790_v19   ;;  %v791_v61 = vsub.f32 %v763_v16, %v777_v12  ;;  %v747_v35 = vmul.f32 %v1985_v18, %v705_v27 }
 0x205   :  { %868 = vperm.xlu1 %1954, %v758_v14  }
 0x206   :  { %v775_v31 = vmul.f32 %v747_v35, %v2787_v0 }
 0x208   :  { %808 = vperm.xlu0 %1955, %v746_v30   ;;  %v789_v6 = vsub.f32 %v761_v21, %v775_v31 }
 0x209   :  { %961 = vperm.xlu1 %1954, %v799_v49  }
 0x20b   :  { %v1987_v10 = vpop.eup %1986 }
 0x20c   :  { %906 = vperm.xlu0 %1955, %v788_v8   ;;  %v745_v59 = vmul.f32 %v1987_v10, %v703_v57 }
 0x20d   :  { %966 = vperm.xlu1 %1954, %v800_v20  }
 0x20e   :  { %v773_v33 = vmul.f32 %v745_v59, %v563_v54 }
 0x210   :  { %v787_v0 = vsub.f32 %v759_v11, %v773_v33 }
 0x211   :  { %823 = vperm.xlu1 %1954, %v749_v23  }
 0x215   :  { %921 = vperm.xlu1 %1954, %v791_v61  }
 0x219   :  { %813 = vperm.xlu1 %1954, %v747_v35  }
 0x21d   :  { %911 = vperm.xlu1 %1954, %v789_v6  }
 0x221   :  { %803 = vperm.xlu1 %1954, %v745_v59  }
 0x225   :  { %901 = vperm.xlu1 %1954, %v787_v0  }
 0x25f   :  { %v839_v17 = vpop.permute.xlu0 %838 }
 0x260   :  { %v2849_v62 = vpop.permute.xlu1 %833 }
 0x263   :  { %v849_v30 = vpop.permute.xlu0 %848 }
 0x264   :  { %v2851_v19 = vpop.permute.xlu1 %931 }
 0x267   :  { %v947_v45 = vpop.permute.xlu0 %946 }
 0x268   :  { %v844_v43 = vpop.permute.xlu1 %843 }
 0x269   :  { %v888_v57 = vmul.f32 %v844_v43, %v2527_v44  ;;  %v886_v44 = vmul.f32 %v839_v17, %v2520_v36 }
 0x26b   :  { %v864_v47 = vpop.permute.xlu0 %863 }
 0x26c   :  { %v942_v14 = vpop.permute.xlu1 %941  ;;  %v895_v20 = vmul.f32 %v864_v47, %v2575_v56  ;;  %v896_v23 = vmul.f32 %v864_v47, %v2572_v53  ;;  %v887_v47 = vmul.f32 %v844_v43, %v2529_v46  ;;  %v885_v46 = vmul.f32 %v839_v17, %v2522_v37 }
 0x26d   :  { %v986_v11 = vadd.f32 %v942_v14, %v888_v57 }
 0x26f   :  { %v937_v49 = vpop.permute.xlu0 %936 }
 0x270   :  { %v854_v7 = vpop.permute.xlu1 %853 }
 0x271   :  { %v892_v16 = vmul.f32 %v854_v7, %v2548_v22  ;;  %v891_v53 = vmul.f32 %v854_v7, %v2551_v26  ;;  %v890_v22 = vmul.f32 %v849_v30, %v2536_v15  ;;  %v889_v26 = vmul.f32 %v849_v30, %v2539_v55 }
 0x272   :  { %v985_v7 = vadd.f32 %v942_v14, %v887_v47  ;;  %v884_v15 = vmul.f32 %v2849_v62, %v2513_v28  ;;  %v883_v55 = vmul.f32 %v2849_v62, %v2515_v29  ;;  %v983_v14 = vadd.f32 %v937_v49, %v885_v46  ;;  %v1049_v47 = vld [vmem:[%s3820_s5 + $0x130] sm:$0xff] }
 0x273   :  { %v2853_v9 = vpop.permute.xlu0 %828  ;;  %v987_v43 = vadd.f32 %v947_v45, %v889_v26 }
 0x274   :  { %v859_v4 = vpop.permute.xlu1 %858  ;;  %v982_v36 = vadd.f32 %v2851_v19, %v884_v15  ;;  %v882_v37 = vmul.f32 %v2853_v9, %v2604_v41  ;;  %v881_v62 = vmul.f32 %v2853_v9, %v2626_v52  ;;  %v1015_v15 = vld [vmem:[%s3820_s5 + $0x20] sm:$0xff] }
 0x275   :  { %v894_v48 = vmul.f32 %v859_v4, %v2560_v39  ;;  %v893_v39 = vmul.f32 %v859_v4, %v2563_v42  ;;  %v988_v42 = vadd.f32 %v947_v45, %v890_v22  ;;  %v1005_v30 = vpack.c.bf16 %v987_v43, %v985_v7  ;;  %v1053_v43 = vld [vmem:[%s3820_s5 + $0x150] sm:$0xff] }
 0x276   :  { %v981_v45 = vadd.f32 %v2851_v19, %v883_v55 }
 0x277   :  { %v2856_v8 = vpop.permute.xlu0 %926 }
 0x278   :  { %v952_v54 = vpop.permute.xlu1 %951  ;;  %v1003_v29 = vpack.c.bf16 %v983_v14, %v981_v45  ;;  %v1055_v14 = vld [vmem:[%s3820_s5 + $0x160] sm:$0xff] }
 0x279   :  { %v990_v6 = vadd.f32 %v952_v54, %v892_v16 }
 0x27b   :  { %v819_v33 = vpop.permute.xlu0 %818 }
 0x27c   :  { %v957_v34 = vpop.permute.xlu1 %956 }
 0x27d   :  { %v992_v27 = vadd.f32 %v957_v34, %v894_v48  ;;  %v984_v48 = vadd.f32 %v937_v49, %v886_v44  ;;  %v1013_v44 = vld [vmem:[%s3820_s5 + $0x10] sm:$0xff] }
 0x27f   :  { %v1008_v0 = vpack.c.bf16 %v992_v27, %v990_v6  ;;  %v878_v27 = vmul.f32 %v819_v33, %v2644_v5 }
 0x280   :  { %v869_v50 = vpop.permute.xlu1 %868 }
 0x281   :  { %v897_v12 = vmul.f32 %v869_v50, %v2591_v32  ;;  %v898_v18 = vmul.f32 %v869_v50, %v2584_v25  ;;  %v991_v32 = vadd.f32 %v957_v34, %v893_v39  ;;  %v989_v50 = vadd.f32 %v952_v54, %v891_v53  ;;  %v917_v54 = vpop.permute.xlu0 %916 }
 0x283   :  { %v1007_v4 = vpack.c.bf16 %v991_v32, %v989_v50  ;;  %v1050_v50 = vld [vmem:[%s3820_s5 + $0x138] sm:$0xff] }
 0x284   :  { %v962_v13 = vpop.permute.xlu1 %961  ;;  %v1114_v26 = vpack.c.bf16 %v1050_v50, %v1049_v47  ;;  %v1034_v47 = vld [vmem:[%s3820_s5 + $0xb8] sm:$0xff] }
 0x285   :  { %v993_v35 = vadd.f32 %v962_v13, %v895_v20  ;;  %v994_v31 = vadd.f32 %v962_v13, %v896_v23  ;;  %v1006_v13 = vpack.c.bf16 %v988_v42, %v986_v11  ;;  %v1004_v23 = vpack.c.bf16 %v984_v48, %v982_v36  ;;  %v809_v49 = vpop.permute.xlu0 %808  ;;  %v1014_v42 = vld [vmem:[%s3820_s5 + $0x18] sm:$0xff]  ;;  %v1017_v36 = vld [vmem:[%s3820_s5 + $0x30] sm:$0xff] }
 0x286   :  { %v873_v5 = vmul.f32 %v809_v49, %v2477_v1  ;;  %v1047_v1 = vld [vmem:[%s3820_s5 + $0x120] sm:$0xff]  ;;  %v1096_v7 = vpack.c.bf16 %v1014_v42, %v1013_v44 }
 0x287   :  { %v1071_v42 = vld [vmem:[%s3820_s5 + $0x1e0] sm:$0xff] }
 0x288   :  { %v967_v61 = vpop.permute.xlu1 %966 }
 0x289   :  { %v995_v10 = vadd.f32 %v967_v61, %v897_v12  ;;  %v996_v21 = vadd.f32 %v967_v61, %v898_v18  ;;  %v907_v57 = vpop.permute.xlu0 %906 }
 0x28b   :  { %v1009_v56 = vpack.c.bf16 %v995_v10, %v993_v35  ;;  %v1010_v59 = vpack.c.bf16 %v996_v21, %v994_v31  ;;  %v877_v31 = vmul.f32 %v819_v33, %v2665_v2 }
 0x28c   :  { %v824_v25 = vpop.permute.xlu1 %823 }
 0x28d   :  { %1266 = vmatprep.subr.bf16.mxu0 %v1010_v59  ;;  %1939 = vmatprep.subr.bf16.mxu1 %v1010_v59  ;;  %v880_v20 = vmul.f32 %v824_v25, %v2600_v40  ;;  %v879_v12 = vmul.f32 %v824_v25, %v2622_v51  ;;  %v980_v40 = vadd.f32 %v2856_v8, %v882_v37  ;;  %v1020_v37 = vld [vmem:[%s3820_s5 + $0x48] sm:$0xff] }
 0x28e   :  { %1267 = vmatpush1.bf16.msra.mxu0 %v1009_v56  ;;  %1946 = vmatpush1.bf16.msra.mxu1 %v1009_v56  ;;  %v979_v51 = vadd.f32 %v2856_v8, %v881_v62  ;;  %v975_v39 = vadd.f32 %v917_v54, %v877_v31  ;;  %v874_v8 = vmul.f32 %v809_v49, %v2672_v38  ;;  %v1012_v38 = vld [vmem:[%s3820_s5 + $0x8] sm:$0xff]  ;;  %v1025_v31 = vld [vmem:[%s3820_s5 + $0x70] sm:$0xff] }
 0x28f   :  { %1268 = vmatprep.subr.bf16.mxu0 %v1008_v0  ;;  %1940 = vmatprep.subr.bf16.mxu1 %v1008_v0  ;;  %v971_v59 = vadd.f32 %v907_v57, %v873_v5  ;;  %v1027_v5 = vld [vmem:[%s3820_s5 + $0x80] sm:$0xff] }
 0x290   :  { %v922_v34 = vpop.permute.xlu1 %921  ;;  %v972_v53 = vadd.f32 %v907_v57, %v874_v8  ;;  %v1028_v57 = vld [vmem:[%s3820_s5 + $0x88] sm:$0xff] }
 0x291   :  { %v978_v17 = vadd.f32 %v922_v34, %v880_v20  ;;  %v977_v16 = vadd.f32 %v922_v34, %v879_v12  ;;  %v1052_v34 = vld [vmem:[%s3820_s5 + $0x148] sm:$0xff]  ;;  %v1018_v20 = vld [vmem:[%s3820_s5 + $0x38] sm:$0xff]  ;;  %v1057_v12 = vld [vmem:[%s3820_s5 + $0x170] sm:$0xff] }
 0x292   :  { %1269 = vmatpush1.bf16.msra.mxu0 %v1007_v4  ;;  %1947 = vmatpush1.bf16.msra.mxu1 %v1007_v4  ;;  %v1051_v4 = vld [vmem:[%s3820_s5 + $0x140] sm:$0xff] }
 0x293   :  { %1270 = vmatprep.subr.bf16.mxu0 %v1006_v13  ;;  %1941 = vmatprep.subr.bf16.mxu1 %v1006_v13  ;;  %v1002_v19 = vpack.c.bf16 %v980_v40, %v978_v17  ;;  %v1001_v10 = vpack.c.bf16 %v979_v51, %v977_v16  ;;  %v1016_v13 = vld [vmem:[%s3820_s5 + $0x28] sm:$0xff]  ;;  %v1115_v48 = vpack.c.bf16 %v1052_v34, %v1051_v4  ;;  %v1058_v40 = vld [vmem:[%s3820_s5 + $0x178] sm:$0xff]  ;;  %v1059_v16 = vld [vmem:[%s3820_s5 + $0x180] sm:$0xff] }
 0x294   :  { %v814_v28 = vpop.permute.xlu1 %813  ;;  %v1097_v46 = vpack.c.bf16 %v1016_v13, %v1015_v15  ;;  %v1118_v62 = vpack.c.bf16 %v1058_v40, %v1057_v12  ;;  %v1036_v4 = vld [vmem:[%s3820_s5 + $0xc8] sm:$0xff]  ;;  %v1073_v13 = vld [vmem:[%s3820_s5 + $0x1f0] sm:$0xff]  ;;  %v1042_v12 = vld [vmem:[%s3820_s5 + $0xf8] sm:$0xff] }
 0x295   :  { %v876_v18 = vmul.f32 %v814_v28, %v2632_v58  ;;  %v875_v35 = vmul.f32 %v814_v28, %v2653_v24  ;;  %v976_v58 = vadd.f32 %v917_v54, %v878_v27  ;;  %v1054_v54 = vld [vmem:[%s3820_s5 + $0x158] sm:$0xff]  ;;  %v1056_v28 = vld [vmem:[%s3820_s5 + $0x168] sm:$0xff]  ;;  %v1023_v27 = vld [vmem:[%s3820_s5 + $0x60] sm:$0xff] }
 0x296   :  { %1271 = vmatpush1.bf16.msra.mxu0 %v1005_v30  ;;  %1948 = vmatpush1.bf16.msra.mxu1 %v1005_v30  ;;  %v1116_v55 = vpack.c.bf16 %v1054_v54, %v1053_v43  ;;  %v1098_v30 = vpack.c.bf16 %v1018_v20, %v1017_v36  ;;  %v1117_v17 = vpack.c.bf16 %v1056_v28, %v1055_v14  ;;  %v1038_v43 = vld [vmem:[%s3820_s5 + $0xd8] sm:$0xff]  ;;  %v1075_v20 = vld [vmem:[%s3820_s5 + $0x200] sm:$0xff]  ;;  %v1040_v14 = vld [vmem:[%s3820_s5 + $0xe8] sm:$0xff] }
 0x297   :  { %1272 = vmatprep.subr.bf16.mxu0 %v1004_v23  ;;  %1942 = vmatprep.subr.bf16.mxu1 %v1004_v23  ;;  %v1019_v23 = vld [vmem:[%s3820_s5 + $0x40] sm:$0xff] }
 0x298   :  { %v912_v41 = vpop.permute.xlu1 %911  ;;  %v1099_v45 = vpack.c.bf16 %v1020_v37, %v1019_v23  ;;  %v1077_v37 = vld [vmem:[%s3820_s5 + $0x210] sm:$0xff] }
 0x299   :  { %v974_v61 = vadd.f32 %v912_v41, %v876_v18  ;;  %v973_v52 = vadd.f32 %v912_v41, %v875_v35  ;;  %v1021_v18 = vld [vmem:[%s3820_s5 + $0x50] sm:$0xff]  ;;  %v1060_v41 = vld [vmem:[%s3820_s5 + $0x188] sm:$0xff] }
 0x29a   :  { %1273 = vmatpush1.bf16.msra.mxu0 %v1003_v29  ;;  %1949 = vmatpush1.bf16.msra.mxu1 %v1003_v29  ;;  %v1022_v29 = vld [vmem:[%s3820_s5 + $0x58] sm:$0xff]  ;;  %v1061_v35 = vld [vmem:[%s3820_s5 + $0x190] sm:$0xff] }
 0x29b   :  { %1274 = vmatprep.subr.bf16.mxu0 %v1002_v19  ;;  %1943 = vmatprep.subr.bf16.mxu1 %v1002_v19  ;;  %v1000_v21 = vpack.c.bf16 %v976_v58, %v974_v61  ;;  %v999_v56 = vpack.c.bf16 %v975_v39, %v973_v52  ;;  %v1100_v49 = vpack.c.bf16 %v1022_v29, %v1021_v18  ;;  %v1024_v19 = vld [vmem:[%s3820_s5 + $0x68] sm:$0xff]  ;;  %v1062_v58 = vld [vmem:[%s3820_s5 + $0x198] sm:$0xff]  ;;  %v1079_v29 = vld [vmem:[%s3820_s5 + $0x220] sm:$0xff] }
 0x29c   :  { %v804_v9 = vpop.permute.xlu1 %803  ;;  %v1119_v61 = vpack.c.bf16 %v1060_v41, %v1059_v16  ;;  %v1101_v51 = vpack.c.bf16 %v1024_v19, %v1023_v27  ;;  %v1120_v52 = vpack.c.bf16 %v1062_v58, %v1061_v35  ;;  %v1064_v39 = vld [vmem:[%s3820_s5 + $0x1a8] sm:$0xff]  ;;  %v1081_v19 = vld [vmem:[%s3820_s5 + $0x230] sm:$0xff]  ;;  %v1046_v35 = vld [vmem:[%s3820_s5 + $0x118] sm:$0xff] }
 0x29d   :  { %v871_v24 = vmul.f32 %v804_v9, %v2471_v60  ;;  %v872_v6 = vmul.f32 %v804_v9, %v2473_v63  ;;  %v1048_v60 = vld [vmem:[%s3820_s5 + $0x128] sm:$0xff]  ;;  %v1011_v63 = vld [vmem:[%s3820_s5] sm:$0xff] }
 0x29e   :  { %1275 = vmatpush1.bf16.msra.mxu0 %v1001_v10  ;;  %1950 = vmatpush1.bf16.msra.mxu1 %v1001_v10  ;;  %v1113_v11 = vpack.c.bf16 %v1048_v60, %v1047_v1  ;;  %v1095_v0 = vpack.c.bf16 %v1012_v38, %v1011_v63  ;;  %v1026_v10 = vld [vmem:[%s3820_s5 + $0x78] sm:$0xff]  ;;  %v1068_v1 = vld [vmem:[%s3820_s5 + $0x1c8] sm:$0xff]  ;;  %v1031_v60 = vld [vmem:[%s3820_s5 + $0xa0] sm:$0xff] }
 0x29f   :  { %1276 = vmatprep.subr.bf16.mxu0 %v1000_v21  ;;  %1944 = vmatprep.subr.bf16.mxu1 %v1000_v21  ;;  %v1102_v9 = vpack.c.bf16 %v1026_v10, %v1025_v31  ;;  %v1063_v21 = vld [vmem:[%s3820_s5 + $0x1a0] sm:$0xff]  ;;  %v1032_v63 = vld [vmem:[%s3820_s5 + $0xa8] sm:$0xff] }
 0x2a0   :  { %v902_v2 = vpop.permute.xlu1 %901  ;;  %v1121_v8 = vpack.c.bf16 %v1064_v39, %v1063_v21  ;;  %v1044_v16 = vld [vmem:[%s3820_s5 + $0x108] sm:$0xff]  ;;  %v1083_v10 = vld [vmem:[%s3820_s5 + $0x240] sm:$0xff]  ;;  %v1085_v21 = vld [vmem:[%s3820_s5 + $0x250] sm:$0xff] }
 0x2a1   :  { %v969_v32 = vadd.f32 %v902_v2, %v871_v24  ;;  %v970_v33 = vadd.f32 %v902_v2, %v872_v6  ;;  %v1103_v24 = vpack.c.bf16 %v1028_v57, %v1027_v5  ;;  %v1065_v6 = vld [vmem:[%s3820_s5 + $0x1b0] sm:$0xff]  ;;  %v1086_v39 = vld [vmem:[%s3820_s5 + $0x258] sm:$0xff]  ;;  %v1087_v57 = vld [vmem:[%s3820_s5 + $0x260] sm:$0xff] }
 0x2a2   :  { %1277 = vmatpush1.bf16.msra.mxu0 %v999_v56  ;;  %1951 = vmatpush1.bf16.msra.mxu1 %v999_v56  ;;  %v1066_v56 = vld [vmem:[%s3820_s5 + $0x1b8] sm:$0xff]  ;;  %v1029_v2 = vld [vmem:[%s3820_s5 + $0x90] sm:$0xff]  ;;  %v1132_v5 = vpack.c.bf16 %v1086_v39, %v1085_v21 }
 0x2a3   :  { %v997_v25 = vpack.c.bf16 %v971_v59, %v969_v32  ;;  %v998_v22 = vpack.c.bf16 %v972_v53, %v970_v33  ;;  %v1030_v59 = vld [vmem:[%s3820_s5 + $0x98] sm:$0xff]  ;;  %v1122_v53 = vpack.c.bf16 %v1066_v56, %v1065_v6  ;;  %v1067_v33 = vld [vmem:[%s3820_s5 + $0x1c0] sm:$0xff]  ;;  %v1089_v6 = vld [vmem:[%s3820_s5 + $0x270] sm:$0xff] }
 0x2a4   :  { %v1104_v32 = vpack.c.bf16 %v1030_v59, %v1029_v2  ;;  %v1123_v38 = vpack.c.bf16 %v1068_v1, %v1067_v33  ;;  %v1090_v56 = vld [vmem:[%s3820_s5 + $0x278] sm:$0xff]  ;;  %v1091_v59 = vld [vmem:[%s3820_s5 + $0x280] sm:$0xff]  ;;  %v1093_v33 = vld [vmem:[%s3820_s5 + $0x290] sm:$0xff] }
 0x2a5   :  { %1278 = vmatprep.subr.bf16.mxu0 %v998_v22  ;;  %1945 = vmatprep.subr.bf16.mxu1 %v998_v22  ;;  %v1069_v22 = vld [vmem:[%s3820_s5 + $0x1d0] sm:$0xff]  ;;  %v1134_v2 = vpack.c.bf16 %v1090_v56, %v1089_v6  ;;  %v1094_v1 = vld [vmem:[%s3820_s5 + $0x298] sm:$0xff] }
 0x2a6   :  { %1279 = vmatpush1.bf16.msra.mxu0 %v997_v25  ;;  %1952 = vmatpush1.bf16.msra.mxu1 %v997_v25  ;;  %v1105_v25 = vpack.c.bf16 %v1032_v63, %v1031_v60  ;;  %v1136_v60 = vpack.c.bf16 %v1094_v1, %v1093_v33 }
 0x2a9   :  { %1915 = vmatmul.mubr.msk.bf16.vlgmr.msra.gmra.mxu1 %vm1137_vm2, %v1113_v11  ;;  %1897 = vmatmul.mubr.msk.bf16.vlgmr.msra.gmra.mxu0 %vm1137_vm2, %v1095_v0  ;;  %v1070_v11 = vld [vmem:[%s3820_s5 + $0x1d8] sm:$0xff]  ;;  %v1033_v0 = vld [vmem:[%s3820_s5 + $0xb0] sm:$0xff] }
 0x2aa   :  { %1486 = vmatprep.mubr.bf16.mxu1 %v1988_v3  ;;  %1306 = vmatprep.mubr.bf16.mxu0 %v1988_v3  ;;  %v1124_v50 = vpack.c.bf16 %v1070_v11, %v1069_v22  ;;  %v1106_v44 = vpack.c.bf16 %v1034_v47, %v1033_v0 }
 0x2b1   :  { %1916 = vmatmul.mubr.msk.bf16.gmra.mxu1 %vm1137_vm2, %v1114_v26  ;;  %1898 = vmatmul.mubr.msk.bf16.gmra.mxu0 %vm1137_vm2, %v1096_v7  ;;  %v1072_v26 = vld [vmem:[%s3820_s5 + $0x1e8] sm:$0xff]  ;;  %v1035_v7 = vld [vmem:[%s3820_s5 + $0xc0] sm:$0xff] }
 0x2b2   :  { %1496 = vmatprep.mubr.bf16.mxu1 %v1988_v3  ;;  %1316 = vmatprep.mubr.bf16.mxu0 %v1988_v3  ;;  %v1125_v34 = vpack.c.bf16 %v1072_v26, %v1071_v42  ;;  %v1107_v15 = vpack.c.bf16 %v1036_v4, %v1035_v7 }
 0x2b9   :  { %1917 = vmatmul.mubr.msk.bf16.gmra.mxu1 %vm1137_vm2, %v1115_v48  ;;  %1899 = vmatmul.mubr.msk.bf16.gmra.mxu0 %vm1137_vm2, %v1097_v46  ;;  %v1074_v48 = vld [vmem:[%s3820_s5 + $0x1f8] sm:$0xff]  ;;  %v1037_v46 = vld [vmem:[%s3820_s5 + $0xd0] sm:$0xff] }
 0x2ba   :  { %1506 = vmatprep.mubr.bf16.mxu1 %v1988_v3  ;;  %1326 = vmatprep.mubr.bf16.mxu0 %v1988_v3  ;;  %v1126_v54 = vpack.c.bf16 %v1074_v48, %v1073_v13  ;;  %v1108_v36 = vpack.c.bf16 %v1038_v43, %v1037_v46 }
 0x2c1   :  { %1918 = vmatmul.mubr.msk.bf16.gmra.mxu1 %vm1137_vm2, %v1116_v55  ;;  %1900 = vmatmul.mubr.msk.bf16.gmra.mxu0 %vm1137_vm2, %v1098_v30  ;;  %v1076_v55 = vld [vmem:[%s3820_s5 + $0x208] sm:$0xff]  ;;  %v1039_v30 = vld [vmem:[%s3820_s5 + $0xe0] sm:$0xff] }
 0x2c2   :  { %1516 = vmatprep.mubr.bf16.mxu1 %v1988_v3  ;;  %1336 = vmatprep.mubr.bf16.mxu0 %v1988_v3  ;;  %v1127_v28 = vpack.c.bf16 %v1076_v55, %v1075_v20  ;;  %v1109_v23 = vpack.c.bf16 %v1040_v14, %v1039_v30 }
 0x2c9   :  { %1919 = vmatmul.mubr.msk.bf16.gmra.mxu1 %vm1137_vm2, %v1117_v17  ;;  %1901 = vmatmul.mubr.msk.bf16.gmra.mxu0 %vm1137_vm2, %v1099_v45  ;;  %v1078_v17 = vld [vmem:[%s3820_s5 + $0x218] sm:$0xff]  ;;  %v1041_v45 = vld [vmem:[%s3820_s5 + $0xf0] sm:$0xff] }
 0x2ca   :  { %1526 = vmatprep.mubr.bf16.mxu1 %v1988_v3  ;;  %1346 = vmatprep.mubr.bf16.mxu0 %v1988_v3  ;;  %v1128_v40 = vpack.c.bf16 %v1078_v17, %v1077_v37  ;;  %v1110_v18 = vpack.c.bf16 %v1042_v12, %v1041_v45 }
 0x2d1   :  { %1920 = vmatmul.mubr.msk.bf16.gmra.mxu1 %vm1137_vm2, %v1118_v62  ;;  %1902 = vmatmul.mubr.msk.bf16.gmra.mxu0 %vm1137_vm2, %v1100_v49  ;;  %v1080_v62 = vld [vmem:[%s3820_s5 + $0x228] sm:$0xff]  ;;  %v1043_v49 = vld [vmem:[%s3820_s5 + $0x100] sm:$0xff] }
 0x2d2   :  { %1536 = vmatprep.mubr.bf16.mxu1 %v1988_v3  ;;  %1356 = vmatprep.mubr.bf16.mxu0 %v1988_v3  ;;  %v1129_v41 = vpack.c.bf16 %v1080_v62, %v1079_v29  ;;  %v1111_v27 = vpack.c.bf16 %v1044_v16, %v1043_v49 }
 0x2d9   :  { %1921 = vmatmul.mubr.msk.bf16.gmra.mxu1 %vm1137_vm2, %v1119_v61  ;;  %1903 = vmatmul.mubr.msk.bf16.gmra.mxu0 %vm1137_vm2, %v1101_v51  ;;  %v1082_v61 = vld [vmem:[%s3820_s5 + $0x238] sm:$0xff]  ;;  %v1045_v51 = vld [vmem:[%s3820_s5 + $0x110] sm:$0xff] }
 0x2da   :  { %1546 = vmatprep.mubr.bf16.mxu1 %v1988_v3  ;;  %1366 = vmatprep.mubr.bf16.mxu0 %v1988_v3  ;;  %v1130_v58 = vpack.c.bf16 %v1082_v61, %v1081_v19  ;;  %v1112_v31 = vpack.c.bf16 %v1046_v35, %v1045_v51 }
 0x2e1   :  { %1922 = vmatmul.mubr.msk.bf16.gmra.mxu1 %vm1137_vm2, %v1120_v52  ;;  %1904 = vmatmul.mubr.msk.bf16.gmra.mxu0 %vm1137_vm2, %v1102_v9  ;;  %v1084_v52 = vld [vmem:[%s3820_s5 + $0x248] sm:$0xff] }
 0x2e2   :  { %1556 = vmatprep.mubr.bf16.mxu1 %v1988_v3  ;;  %1376 = vmatprep.mubr.bf16.mxu0 %v1988_v3  ;;  %v1131_v9 = vpack.c.bf16 %v1084_v52, %v1083_v10 }
 0x2e9   :  { %1923 = vmatmul.mubr.msk.bf16.gmra.mxu1 %vm1137_vm2, %v1121_v8  ;;  %1905 = vmatmul.mubr.msk.bf16.gmra.mxu0 %vm1137_vm2, %v1103_v24  ;;  %v1088_v8 = vld [vmem:[%s3820_s5 + $0x268] sm:$0xff] }
 0x2ea   :  { %1566 = vmatprep.mubr.bf16.mxu1 %v1988_v3  ;;  %1386 = vmatprep.mubr.bf16.mxu0 %v1988_v3  ;;  %v1133_v24 = vpack.c.bf16 %v1088_v8, %v1087_v57 }
 0x2f1   :  { %1924 = vmatmul.mubr.msk.bf16.gmra.mxu1 %vm1137_vm2, %v1122_v53  ;;  %1906 = vmatmul.mubr.msk.bf16.gmra.mxu0 %vm1137_vm2, %v1104_v32  ;;  %v1092_v53 = vld [vmem:[%s3820_s5 + $0x288] sm:$0xff] }
 0x2f2   :  { %1576 = vmatprep.mubr.bf16.mxu1 %v1988_v3  ;;  %1396 = vmatprep.mubr.bf16.mxu0 %v1988_v3  ;;  %v1135_v32 = vpack.c.bf16 %v1092_v53, %v1091_v59 }
 0x2f9   :  { %1925 = vmatmul.mubr.msk.bf16.gmra.mxu1 %vm1137_vm2, %v1123_v38  ;;  %1907 = vmatmul.mubr.msk.bf16.gmra.mxu0 %vm1137_vm2, %v1105_v25 }
 0x2fa   :  { %1586 = vmatprep.mubr.bf16.mxu1 %v1988_v3  ;;  %1406 = vmatprep.mubr.bf16.mxu0 %v1988_v3 }
 0x301   :  { %1926 = vmatmul.mubr.msk.bf16.gmra.mxu1 %vm1137_vm2, %v1124_v50  ;;  %1908 = vmatmul.mubr.msk.bf16.gmra.mxu0 %vm1137_vm2, %v1106_v44 }
 0x302   :  { %1596 = vmatprep.mubr.bf16.mxu1 %v1988_v3  ;;  %1416 = vmatprep.mubr.bf16.mxu0 %v1988_v3 }
 0x309   :  { %1927 = vmatmul.mubr.msk.bf16.gmra.mxu1 %vm1137_vm2, %v1125_v34  ;;  %1909 = vmatmul.mubr.msk.bf16.gmra.mxu0 %vm1137_vm2, %v1107_v15 }
 0x30a   :  { %1606 = vmatprep.mubr.bf16.mxu1 %v1988_v3  ;;  %1426 = vmatprep.mubr.bf16.mxu0 %v1988_v3 }
 0x311   :  { %1928 = vmatmul.mubr.msk.bf16.gmra.mxu1 %vm1137_vm2, %v1126_v54  ;;  %1910 = vmatmul.mubr.msk.bf16.gmra.mxu0 %vm1137_vm2, %v1108_v36 }
 0x312   :  { %1616 = vmatprep.mubr.bf16.mxu1 %v1988_v3  ;;  %1436 = vmatprep.mubr.bf16.mxu0 %v1988_v3 }
 0x319   :  { %1929 = vmatmul.mubr.msk.bf16.gmra.mxu1 %vm1137_vm2, %v1127_v28  ;;  %1911 = vmatmul.mubr.msk.bf16.gmra.mxu0 %vm1137_vm2, %v1109_v23 }
 0x31a   :  { %1626 = vmatprep.mubr.bf16.mxu1 %v1988_v3  ;;  %1446 = vmatprep.mubr.bf16.mxu0 %v1988_v3 }
 0x321   :  { %1930 = vmatmul.mubr.msk.bf16.gmra.mxu1 %vm1137_vm2, %v1128_v40  ;;  %1912 = vmatmul.mubr.msk.bf16.gmra.mxu0 %vm1137_vm2, %v1110_v18 }
 0x322   :  { %1636 = vmatprep.mubr.bf16.mxu1 %v1988_v3  ;;  %1456 = vmatprep.mubr.bf16.mxu0 %v1988_v3 }
 0x329   :  { %1931 = vmatmul.mubr.msk.bf16.gmra.mxu1 %vm1137_vm2, %v1129_v41  ;;  %1913 = vmatmul.mubr.msk.bf16.gmra.mxu0 %vm1137_vm2, %v1111_v27 }
 0x32a   :  { %1646 = vmatprep.mubr.bf16.mxu1 %v1988_v3  ;;  %1466 = vmatprep.mubr.bf16.mxu0 %v1988_v3 }
 0x331   :  { %1932 = vmatmul.mubr.msk.bf16.gmra.mxu1 %vm1137_vm2, %v1130_v58  ;;  %1914 = vmatmul.mubr.msk.bf16.gmra.mxu0 %vm1137_vm2, %v1112_v31 }
 0x332   :  { %1656 = vmatprep.mubr.bf16.mxu1 %v1988_v3 }
 0x339   :  { %1933 = vmatmul.mubr.msk.bf16.gmra.mxu1 %vm1137_vm2, %v1131_v9 }
 0x33a   :  { %1666 = vmatprep.mubr.bf16.mxu1 %v1988_v3 }
 0x341   :  { %1934 = vmatmul.mubr.msk.bf16.gmra.mxu1 %vm1137_vm2, %v1132_v5 }
 0x342   :  { %1676 = vmatprep.mubr.bf16.mxu1 %v1988_v3 }
 0x349   :  { %1935 = vmatmul.mubr.msk.bf16.gmra.mxu1 %vm1137_vm2, %v1133_v24 }
 0x34a   :  { %1686 = vmatprep.mubr.bf16.mxu1 %v1988_v3 }
 0x351   :  { %1936 = vmatmul.mubr.msk.bf16.gmra.mxu1 %vm1137_vm2, %v1134_v2 }
 0x352   :  { %1696 = vmatprep.mubr.bf16.mxu1 %v1988_v3 }
 0x359   :  { %1937 = vmatmul.mubr.msk.bf16.gmra.mxu1 %vm1137_vm2, %v1135_v32 }
 0x35a   :  { %1706 = vmatprep.mubr.bf16.mxu1 %v1988_v3 }
 0x361   :  { %1938 = vmatmul.mubr.msk.bf16.gmra.mxu1 %vm1137_vm2, %v1136_v60 }
 0x369   :  { %v1478_v63 = vpop.f32.mrf.mxu1  ;;  %v1298_v38 = vpop.f32.mrf.mxu0 }
 0x36a   :  { %1789 = vst [vmem:[%s3821_s6 + $0x240] sm:$0xff] %v1478_v63  ;;  %1717 = vst [vmem:[%s3821_s6] sm:$0xff] %v1298_v38 }
 0x36b   :  { %v1480_v3 = vpop.f32.mrf.mxu1  ;;  %v1300_v25 = vpop.f32.mrf.mxu0 }
 0x36c   :  { %1790 = vst.msk [vmem:[%s3821_s6 + $0x248] sm:$0xff] %vm506_vm1, %v1480_v3  ;;  %1718 = vst.msk [vmem:[%s3821_s6 + $0x8] sm:$0xff] %vm506_vm1, %v1300_v25 }
 0x36d   :  { %v1482_v22 = vpop.f32.mrf.mxu1  ;;  %v1302_v11 = vpop.f32.mrf.mxu0 }
 0x36e   :  { %1791 = vst [vmem:[%s3821_s6 + $0x250] sm:$0xff] %v1482_v22  ;;  %1719 = vst [vmem:[%s3821_s6 + $0x10] sm:$0xff] %v1302_v11 }
 0x36f   :  { %v1484_v0 = vpop.f32.mrf.mxu1  ;;  %v1304_v47 = vpop.f32.mrf.mxu0 }
 0x370   :  { %1792 = vst.msk [vmem:[%s3821_s6 + $0x258] sm:$0xff] %vm506_vm1, %v1484_v0  ;;  %1720 = vst.msk [vmem:[%s3821_s6 + $0x18] sm:$0xff] %vm506_vm1, %v1304_v47 }
 0x371   :  { %v1488_v50 = vpop.f32.mrf.mxu1  ;;  %v1308_v44 = vpop.f32.mrf.mxu0 }
 0x372   :  { %1793 = vst [vmem:[%s3821_s6 + $0x260] sm:$0xff] %v1488_v50  ;;  %1721 = vst [vmem:[%s3821_s6 + $0x20] sm:$0xff] %v1308_v44 }
 0x373   :  { %v1490_v42 = vpop.f32.mrf.mxu1  ;;  %v1310_v26 = vpop.f32.mrf.mxu0 }
 0x374   :  { %1794 = vst.msk [vmem:[%s3821_s6 + $0x268] sm:$0xff] %vm506_vm1, %v1490_v42  ;;  %1722 = vst.msk [vmem:[%s3821_s6 + $0x28] sm:$0xff] %vm506_vm1, %v1310_v26 }
 0x375   :  { %v1492_v7 = vpop.f32.mrf.mxu1  ;;  %v1312_v4 = vpop.f32.mrf.mxu0 }
 0x376   :  { %1795 = vst [vmem:[%s3821_s6 + $0x270] sm:$0xff] %v1492_v7  ;;  %1723 = vst [vmem:[%s3821_s6 + $0x30] sm:$0xff] %v1312_v4 }
 0x377   :  { %v1494_v34 = vpop.f32.mrf.mxu1  ;;  %v1314_v15 = vpop.f32.mrf.mxu0 }
 0x378   :  { %1796 = vst.msk [vmem:[%s3821_s6 + $0x278] sm:$0xff] %vm506_vm1, %v1494_v34  ;;  %1724 = vst.msk [vmem:[%s3821_s6 + $0x38] sm:$0xff] %vm506_vm1, %v1314_v15 }
 0x379   :  { %v1498_v13 = vpop.f32.mrf.mxu1  ;;  %v1318_v48 = vpop.f32.mrf.mxu0 }
 0x37a   :  { %1797 = vst [vmem:[%s3821_s6 + $0x280] sm:$0xff] %v1498_v13  ;;  %1725 = vst [vmem:[%s3821_s6 + $0x40] sm:$0xff] %v1318_v48 }
 0x37b   :  { %v1500_v46 = vpop.f32.mrf.mxu1  ;;  %v1320_v43 = vpop.f32.mrf.mxu0 }
 0x37c   :  { %1798 = vst.msk [vmem:[%s3821_s6 + $0x288] sm:$0xff] %vm506_vm1, %v1500_v46  ;;  %1726 = vst.msk [vmem:[%s3821_s6 + $0x48] sm:$0xff] %vm506_vm1, %v1320_v43 }
 0x37d   :  { %v1502_v54 = vpop.f32.mrf.mxu1  ;;  %v1322_v36 = vpop.f32.mrf.mxu0 }
 0x37e   :  { %1799 = vst [vmem:[%s3821_s6 + $0x290] sm:$0xff] %v1502_v54  ;;  %1727 = vst [vmem:[%s3821_s6 + $0x50] sm:$0xff] %v1322_v36 }
 0x37f   :  { %v1504_v20 = vpop.f32.mrf.mxu1  ;;  %v1324_v55 = vpop.f32.mrf.mxu0 }
 0x380   :  { %1800 = vst.msk [vmem:[%s3821_s6 + $0x298] sm:$0xff] %vm506_vm1, %v1504_v20  ;;  %1728 = vst.msk [vmem:[%s3821_s6 + $0x58] sm:$0xff] %vm506_vm1, %v1324_v55 }
 0x381   :  { %v1508_v30 = vpop.f32.mrf.mxu1  ;;  %v1328_v14 = vpop.f32.mrf.mxu0 }
 0x382   :  { %1801 = vst [vmem:[%s3821_s6 + $0x2a0] sm:$0xff] %v1508_v30  ;;  %1729 = vst [vmem:[%s3821_s6 + $0x60] sm:$0xff] %v1328_v14 }
 0x383   :  { %v1510_v28 = vpop.f32.mrf.mxu1  ;;  %v1330_v23 = vpop.f32.mrf.mxu0 }
 0x384   :  { %1802 = vst.msk [vmem:[%s3821_s6 + $0x2a8] sm:$0xff] %vm506_vm1, %v1510_v28  ;;  %1730 = vst.msk [vmem:[%s3821_s6 + $0x68] sm:$0xff] %vm506_vm1, %v1330_v23 }
 0x385   :  { %v1512_v37 = vpop.f32.mrf.mxu1  ;;  %v1332_v17 = vpop.f32.mrf.mxu0 }
 0x386   :  { %1803 = vst [vmem:[%s3821_s6 + $0x2b0] sm:$0xff] %v1512_v37  ;;  %1731 = vst [vmem:[%s3821_s6 + $0x70] sm:$0xff] %v1332_v17 }
 0x387   :  { %v1514_v45 = vpop.f32.mrf.mxu1  ;;  %v1334_v12 = vpop.f32.mrf.mxu0 }
 0x388   :  { %1804 = vst.msk [vmem:[%s3821_s6 + $0x2b8] sm:$0xff] %vm506_vm1, %v1514_v45  ;;  %1732 = vst.msk [vmem:[%s3821_s6 + $0x78] sm:$0xff] %vm506_vm1, %v1334_v12 }
 0x389   :  { %v1518_v40 = vpop.f32.mrf.mxu1  ;;  %v1338_v18 = vpop.f32.mrf.mxu0 }
 0x38a   :  { %1805 = vst [vmem:[%s3821_s6 + $0x2c0] sm:$0xff] %v1518_v40  ;;  %1733 = vst [vmem:[%s3821_s6 + $0x80] sm:$0xff] %v1338_v18 }
 0x38b   :  { %v1520_v29 = vpop.f32.mrf.mxu1  ;;  %v1340_v62 = vpop.f32.mrf.mxu0 }
 0x38c   :  { %1806 = vst.msk [vmem:[%s3821_s6 + $0x2c8] sm:$0xff] %vm506_vm1, %v1520_v29  ;;  %1734 = vst.msk [vmem:[%s3821_s6 + $0x88] sm:$0xff] %vm506_vm1, %v1340_v62 }
 0x38d   :  { %v1522_v49 = vpop.f32.mrf.mxu1  ;;  %v1342_v16 = vpop.f32.mrf.mxu0 }
 0x38e   :  { %1807 = vst [vmem:[%s3821_s6 + $0x2d0] sm:$0xff] %v1522_v49  ;;  %1735 = vst [vmem:[%s3821_s6 + $0x90] sm:$0xff] %v1342_v16 }
 0x38f   :  { %v1524_v41 = vpop.f32.mrf.mxu1  ;;  %v1344_v27 = vpop.f32.mrf.mxu0 }
 0x390   :  { %1808 = vst.msk [vmem:[%s3821_s6 + $0x2d8] sm:$0xff] %vm506_vm1, %v1524_v41  ;;  %1736 = vst.msk [vmem:[%s3821_s6 + $0x98] sm:$0xff] %vm506_vm1, %v1344_v27 }
 0x391   :  { %v1528_v19 = vpop.f32.mrf.mxu1  ;;  %v1348_v61 = vpop.f32.mrf.mxu0 }
 0x392   :  { %1809 = vst [vmem:[%s3821_s6 + $0x2e0] sm:$0xff] %v1528_v19  ;;  %1737 = vst [vmem:[%s3821_s6 + $0xa0] sm:$0xff] %v1348_v61 }
 0x393   :  { %v1530_v51 = vpop.f32.mrf.mxu1  ;;  %v1350_v35 = vpop.f32.mrf.mxu0 }
 0x394   :  { %1810 = vst.msk [vmem:[%s3821_s6 + $0x2e8] sm:$0xff] %vm506_vm1, %v1530_v51  ;;  %1738 = vst.msk [vmem:[%s3821_s6 + $0xa8] sm:$0xff] %vm506_vm1, %v1350_v35 }
 0x395   :  { %v1532_v58 = vpop.f32.mrf.mxu1  ;;  %v1352_v31 = vpop.f32.mrf.mxu0 }
 0x396   :  { %1811 = vst [vmem:[%s3821_s6 + $0x2f0] sm:$0xff] %v1532_v58  ;;  %1739 = vst [vmem:[%s3821_s6 + $0xb0] sm:$0xff] %v1352_v31 }
 0x397   :  { %v1534_v10 = vpop.f32.mrf.mxu1  ;;  %v1354_v52 = vpop.f32.mrf.mxu0 }
 0x398   :  { %1812 = vst.msk [vmem:[%s3821_s6 + $0x2f8] sm:$0xff] %vm506_vm1, %v1534_v10  ;;  %1740 = vst.msk [vmem:[%s3821_s6 + $0xb8] sm:$0xff] %vm506_vm1, %v1354_v52 }
 0x399   :  { %v1538_v9 = vpop.f32.mrf.mxu1  ;;  %v1358_v21 = vpop.f32.mrf.mxu0 }
 0x39a   :  { %1813 = vst [vmem:[%s3821_s6 + $0x300] sm:$0xff] %v1538_v9  ;;  %1741 = vst [vmem:[%s3821_s6 + $0xc0] sm:$0xff] %v1358_v21 }
 0x39b   :  { %v1540_v39 = vpop.f32.mrf.mxu1  ;;  %v1360_v5 = vpop.f32.mrf.mxu0 }
 0x39c   :  { %1814 = vst.msk [vmem:[%s3821_s6 + $0x308] sm:$0xff] %vm506_vm1, %v1540_v39  ;;  %1742 = vst.msk [vmem:[%s3821_s6 + $0xc8] sm:$0xff] %vm506_vm1, %v1360_v5 }
 0x39d   :  { %v1542_v57 = vpop.f32.mrf.mxu1  ;;  %v1362_v8 = vpop.f32.mrf.mxu0 }
 0x39e   :  { %1815 = vst [vmem:[%s3821_s6 + $0x310] sm:$0xff] %v1542_v57  ;;  %1743 = vst [vmem:[%s3821_s6 + $0xd0] sm:$0xff] %v1362_v8 }
 0x39f   :  { %v1544_v24 = vpop.f32.mrf.mxu1  ;;  %v1364_v6 = vpop.f32.mrf.mxu0 }
 0x3a0   :  { %1816 = vst.msk [vmem:[%s3821_s6 + $0x318] sm:$0xff] %vm506_vm1, %v1544_v24  ;;  %1744 = vst.msk [vmem:[%s3821_s6 + $0xd8] sm:$0xff] %vm506_vm1, %v1364_v6 }
 0x3a1   :  { %v1548_v56 = vpop.f32.mrf.mxu1  ;;  %v1368_v2 = vpop.f32.mrf.mxu0 }
 0x3a2   :  { %1817 = vst [vmem:[%s3821_s6 + $0x320] sm:$0xff] %v1548_v56  ;;  %1745 = vst [vmem:[%s3821_s6 + $0xe0] sm:$0xff] %v1368_v2 }
 0x3a3   :  { %v1550_v59 = vpop.f32.mrf.mxu1  ;;  %v1370_v53 = vpop.f32.mrf.mxu0 }
 0x3a4   :  { %1818 = vst.msk [vmem:[%s3821_s6 + $0x328] sm:$0xff] %vm506_vm1, %v1550_v59  ;;  %1746 = vst.msk [vmem:[%s3821_s6 + $0xe8] sm:$0xff] %vm506_vm1, %v1370_v53 }
 0x3a5   :  { %v1552_v32 = vpop.f32.mrf.mxu1  ;;  %v1372_v33 = vpop.f32.mrf.mxu0 }
 0x3a6   :  { %1819 = vst [vmem:[%s3821_s6 + $0x330] sm:$0xff] %v1552_v32  ;;  %1747 = vst [vmem:[%s3821_s6 + $0xf0] sm:$0xff] %v1372_v33 }
 0x3a7   :  { %v1554_v1 = vpop.f32.mrf.mxu1  ;;  %v1374_v60 = vpop.f32.mrf.mxu0 }
 0x3a8   :  { %1820 = vst.msk [vmem:[%s3821_s6 + $0x338] sm:$0xff] %vm506_vm1, %v1554_v1  ;;  %1748 = vst.msk [vmem:[%s3821_s6 + $0xf8] sm:$0xff] %vm506_vm1, %v1374_v60 }
 0x3a9   :  { %v1558_v63 = vpop.f32.mrf.mxu1  ;;  %v1378_v38 = vpop.f32.mrf.mxu0 }
 0x3aa   :  { %1821 = vst [vmem:[%s3821_s6 + $0x340] sm:$0xff] %v1558_v63  ;;  %1749 = vst [vmem:[%s3821_s6 + $0x100] sm:$0xff] %v1378_v38 }
 0x3ab   :  { %v1560_v3 = vpop.f32.mrf.mxu1  ;;  %v1380_v25 = vpop.f32.mrf.mxu0 }
 0x3ac   :  { %1822 = vst.msk [vmem:[%s3821_s6 + $0x348] sm:$0xff] %vm506_vm1, %v1560_v3  ;;  %1750 = vst.msk [vmem:[%s3821_s6 + $0x108] sm:$0xff] %vm506_vm1, %v1380_v25 }
 0x3ad   :  { %v1562_v22 = vpop.f32.mrf.mxu1  ;;  %v1382_v11 = vpop.f32.mrf.mxu0 }
 0x3ae   :  { %1823 = vst [vmem:[%s3821_s6 + $0x350] sm:$0xff] %v1562_v22  ;;  %1751 = vst [vmem:[%s3821_s6 + $0x110] sm:$0xff] %v1382_v11 }
 0x3af   :  { %v1564_v0 = vpop.f32.mrf.mxu1  ;;  %v1384_v47 = vpop.f32.mrf.mxu0 }
 0x3b0   :  { %1824 = vst.msk [vmem:[%s3821_s6 + $0x358] sm:$0xff] %vm506_vm1, %v1564_v0  ;;  %1752 = vst.msk [vmem:[%s3821_s6 + $0x118] sm:$0xff] %vm506_vm1, %v1384_v47 }
 0x3b1   :  { %v1568_v50 = vpop.f32.mrf.mxu1  ;;  %v1388_v44 = vpop.f32.mrf.mxu0 }
 0x3b2   :  { %1825 = vst [vmem:[%s3821_s6 + $0x360] sm:$0xff] %v1568_v50  ;;  %1753 = vst [vmem:[%s3821_s6 + $0x120] sm:$0xff] %v1388_v44 }
 0x3b3   :  { %v1570_v42 = vpop.f32.mrf.mxu1  ;;  %v1390_v26 = vpop.f32.mrf.mxu0 }
 0x3b4   :  { %1826 = vst.msk [vmem:[%s3821_s6 + $0x368] sm:$0xff] %vm506_vm1, %v1570_v42  ;;  %1754 = vst.msk [vmem:[%s3821_s6 + $0x128] sm:$0xff] %vm506_vm1, %v1390_v26 }
 0x3b5   :  { %v1572_v7 = vpop.f32.mrf.mxu1  ;;  %v1392_v4 = vpop.f32.mrf.mxu0 }
 0x3b6   :  { %1827 = vst [vmem:[%s3821_s6 + $0x370] sm:$0xff] %v1572_v7  ;;  %1755 = vst [vmem:[%s3821_s6 + $0x130] sm:$0xff] %v1392_v4 }
 0x3b7   :  { %v1574_v34 = vpop.f32.mrf.mxu1  ;;  %v1394_v15 = vpop.f32.mrf.mxu0 }
 0x3b8   :  { %1828 = vst.msk [vmem:[%s3821_s6 + $0x378] sm:$0xff] %vm506_vm1, %v1574_v34  ;;  %1756 = vst.msk [vmem:[%s3821_s6 + $0x138] sm:$0xff] %vm506_vm1, %v1394_v15 }
 0x3b9   :  { %v1578_v13 = vpop.f32.mrf.mxu1  ;;  %v1398_v48 = vpop.f32.mrf.mxu0 }
 0x3ba   :  { %1829 = vst [vmem:[%s3821_s6 + $0x380] sm:$0xff] %v1578_v13  ;;  %1757 = vst [vmem:[%s3821_s6 + $0x140] sm:$0xff] %v1398_v48 }
 0x3bb   :  { %v1580_v46 = vpop.f32.mrf.mxu1  ;;  %v1400_v43 = vpop.f32.mrf.mxu0 }
 0x3bc   :  { %1830 = vst.msk [vmem:[%s3821_s6 + $0x388] sm:$0xff] %vm506_vm1, %v1580_v46  ;;  %1758 = vst.msk [vmem:[%s3821_s6 + $0x148] sm:$0xff] %vm506_vm1, %v1400_v43 }
 0x3bd   :  { %v1582_v54 = vpop.f32.mrf.mxu1  ;;  %v1402_v36 = vpop.f32.mrf.mxu0 }
 0x3be   :  { %1831 = vst [vmem:[%s3821_s6 + $0x390] sm:$0xff] %v1582_v54  ;;  %1759 = vst [vmem:[%s3821_s6 + $0x150] sm:$0xff] %v1402_v36 }
 0x3bf   :  { %v1584_v20 = vpop.f32.mrf.mxu1  ;;  %v1404_v55 = vpop.f32.mrf.mxu0 }
 0x3c0   :  { %1832 = vst.msk [vmem:[%s3821_s6 + $0x398] sm:$0xff] %vm506_vm1, %v1584_v20  ;;  %1760 = vst.msk [vmem:[%s3821_s6 + $0x158] sm:$0xff] %vm506_vm1, %v1404_v55 }
 0x3c1   :  { %v1588_v30 = vpop.f32.mrf.mxu1  ;;  %v1408_v14 = vpop.f32.mrf.mxu0 }
 0x3c2   :  { %1833 = vst [vmem:[%s3821_s6 + $0x3a0] sm:$0xff] %v1588_v30  ;;  %1761 = vst [vmem:[%s3821_s6 + $0x160] sm:$0xff] %v1408_v14 }
 0x3c3   :  { %v1590_v28 = vpop.f32.mrf.mxu1  ;;  %v1410_v23 = vpop.f32.mrf.mxu0 }
 0x3c4   :  { %1834 = vst.msk [vmem:[%s3821_s6 + $0x3a8] sm:$0xff] %vm506_vm1, %v1590_v28  ;;  %1762 = vst.msk [vmem:[%s3821_s6 + $0x168] sm:$0xff] %vm506_vm1, %v1410_v23 }
 0x3c5   :  { %v1592_v37 = vpop.f32.mrf.mxu1  ;;  %v1412_v17 = vpop.f32.mrf.mxu0 }
 0x3c6   :  { %1835 = vst [vmem:[%s3821_s6 + $0x3b0] sm:$0xff] %v1592_v37  ;;  %1763 = vst [vmem:[%s3821_s6 + $0x170] sm:$0xff] %v1412_v17 }
 0x3c7   :  { %v1594_v45 = vpop.f32.mrf.mxu1  ;;  %v1414_v12 = vpop.f32.mrf.mxu0 }
 0x3c8   :  { %1836 = vst.msk [vmem:[%s3821_s6 + $0x3b8] sm:$0xff] %vm506_vm1, %v1594_v45  ;;  %1764 = vst.msk [vmem:[%s3821_s6 + $0x178] sm:$0xff] %vm506_vm1, %v1414_v12 }
 0x3c9   :  { %v1598_v40 = vpop.f32.mrf.mxu1  ;;  %v1418_v18 = vpop.f32.mrf.mxu0 }
 0x3ca   :  { %1837 = vst [vmem:[%s3821_s6 + $0x3c0] sm:$0xff] %v1598_v40  ;;  %1765 = vst [vmem:[%s3821_s6 + $0x180] sm:$0xff] %v1418_v18 }
 0x3cb   :  { %v1600_v29 = vpop.f32.mrf.mxu1  ;;  %v1420_v62 = vpop.f32.mrf.mxu0 }
 0x3cc   :  { %1838 = vst.msk [vmem:[%s3821_s6 + $0x3c8] sm:$0xff] %vm506_vm1, %v1600_v29  ;;  %1766 = vst.msk [vmem:[%s3821_s6 + $0x188] sm:$0xff] %vm506_vm1, %v1420_v62 }
 0x3cd   :  { %v1602_v49 = vpop.f32.mrf.mxu1  ;;  %v1422_v16 = vpop.f32.mrf.mxu0 }
 0x3ce   :  { %1839 = vst [vmem:[%s3821_s6 + $0x3d0] sm:$0xff] %v1602_v49  ;;  %1767 = vst [vmem:[%s3821_s6 + $0x190] sm:$0xff] %v1422_v16 }
 0x3cf   :  { %v1604_v41 = vpop.f32.mrf.mxu1  ;;  %v1424_v27 = vpop.f32.mrf.mxu0 }
 0x3d0   :  { %1840 = vst.msk [vmem:[%s3821_s6 + $0x3d8] sm:$0xff] %vm506_vm1, %v1604_v41  ;;  %1768 = vst.msk [vmem:[%s3821_s6 + $0x198] sm:$0xff] %vm506_vm1, %v1424_v27 }
 0x3d1   :  { %v1608_v19 = vpop.f32.mrf.mxu1  ;;  %v1428_v61 = vpop.f32.mrf.mxu0 }
 0x3d2   :  { %1841 = vst [vmem:[%s3821_s6 + $0x3e0] sm:$0xff] %v1608_v19  ;;  %1769 = vst [vmem:[%s3821_s6 + $0x1a0] sm:$0xff] %v1428_v61 }
 0x3d3   :  { %v1610_v51 = vpop.f32.mrf.mxu1  ;;  %v1430_v35 = vpop.f32.mrf.mxu0 }
 0x3d4   :  { %1842 = vst.msk [vmem:[%s3821_s6 + $0x3e8] sm:$0xff] %vm506_vm1, %v1610_v51  ;;  %1770 = vst.msk [vmem:[%s3821_s6 + $0x1a8] sm:$0xff] %vm506_vm1, %v1430_v35 }
 0x3d5   :  { %v1612_v58 = vpop.f32.mrf.mxu1  ;;  %v1432_v31 = vpop.f32.mrf.mxu0 }
 0x3d6   :  { %1843 = vst [vmem:[%s3821_s6 + $0x3f0] sm:$0xff] %v1612_v58  ;;  %1771 = vst [vmem:[%s3821_s6 + $0x1b0] sm:$0xff] %v1432_v31 }
 0x3d7   :  { %v1614_v10 = vpop.f32.mrf.mxu1  ;;  %v1434_v52 = vpop.f32.mrf.mxu0 }
 0x3d8   :  { %1844 = vst.msk [vmem:[%s3821_s6 + $0x3f8] sm:$0xff] %vm506_vm1, %v1614_v10  ;;  %1772 = vst.msk [vmem:[%s3821_s6 + $0x1b8] sm:$0xff] %vm506_vm1, %v1434_v52 }
 0x3d9   :  { %v1618_v9 = vpop.f32.mrf.mxu1  ;;  %v1438_v21 = vpop.f32.mrf.mxu0 }
 0x3da   :  { %1845 = vst [vmem:[%s3821_s6 + $0x400] sm:$0xff] %v1618_v9  ;;  %1773 = vst [vmem:[%s3821_s6 + $0x1c0] sm:$0xff] %v1438_v21 }
 0x3db   :  { %v1620_v39 = vpop.f32.mrf.mxu1  ;;  %v1440_v5 = vpop.f32.mrf.mxu0 }
 0x3dc   :  { %1846 = vst.msk [vmem:[%s3821_s6 + $0x408] sm:$0xff] %vm506_vm1, %v1620_v39  ;;  %1774 = vst.msk [vmem:[%s3821_s6 + $0x1c8] sm:$0xff] %vm506_vm1, %v1440_v5 }
 0x3dd   :  { %v1622_v57 = vpop.f32.mrf.mxu1  ;;  %v1442_v8 = vpop.f32.mrf.mxu0 }
 0x3de   :  { %1847 = vst [vmem:[%s3821_s6 + $0x410] sm:$0xff] %v1622_v57  ;;  %1775 = vst [vmem:[%s3821_s6 + $0x1d0] sm:$0xff] %v1442_v8 }
 0x3df   :  { %v1624_v24 = vpop.f32.mrf.mxu1  ;;  %v1444_v6 = vpop.f32.mrf.mxu0 }
 0x3e0   :  { %1848 = vst.msk [vmem:[%s3821_s6 + $0x418] sm:$0xff] %vm506_vm1, %v1624_v24  ;;  %1776 = vst.msk [vmem:[%s3821_s6 + $0x1d8] sm:$0xff] %vm506_vm1, %v1444_v6 }
 0x3e1   :  { %v1628_v56 = vpop.f32.mrf.mxu1  ;;  %v1448_v2 = vpop.f32.mrf.mxu0 }
 0x3e2   :  { %1849 = vst [vmem:[%s3821_s6 + $0x420] sm:$0xff] %v1628_v56  ;;  %1777 = vst [vmem:[%s3821_s6 + $0x1e0] sm:$0xff] %v1448_v2 }
 0x3e3   :  { %v1630_v59 = vpop.f32.mrf.mxu1  ;;  %v1450_v53 = vpop.f32.mrf.mxu0 }
 0x3e4   :  { %1850 = vst.msk [vmem:[%s3821_s6 + $0x428] sm:$0xff] %vm506_vm1, %v1630_v59  ;;  %1778 = vst.msk [vmem:[%s3821_s6 + $0x1e8] sm:$0xff] %vm506_vm1, %v1450_v53 }
 0x3e5   :  { %v1632_v32 = vpop.f32.mrf.mxu1  ;;  %v1452_v33 = vpop.f32.mrf.mxu0 }
 0x3e6   :  { %1851 = vst [vmem:[%s3821_s6 + $0x430] sm:$0xff] %v1632_v32  ;;  %1779 = vst [vmem:[%s3821_s6 + $0x1f0] sm:$0xff] %v1452_v33 }
 0x3e7   :  { %v1634_v1 = vpop.f32.mrf.mxu1  ;;  %v1454_v60 = vpop.f32.mrf.mxu0 }
 0x3e8   :  { %1852 = vst.msk [vmem:[%s3821_s6 + $0x438] sm:$0xff] %vm506_vm1, %v1634_v1  ;;  %1780 = vst.msk [vmem:[%s3821_s6 + $0x1f8] sm:$0xff] %vm506_vm1, %v1454_v60 }
 0x3e9   :  { %v1638_v63 = vpop.f32.mrf.mxu1  ;;  %v1458_v38 = vpop.f32.mrf.mxu0 }
 0x3ea   :  { %1853 = vst [vmem:[%s3821_s6 + $0x440] sm:$0xff] %v1638_v63  ;;  %1781 = vst [vmem:[%s3821_s6 + $0x200] sm:$0xff] %v1458_v38 }
 0x3eb   :  { %v1640_v3 = vpop.f32.mrf.mxu1  ;;  %v1460_v25 = vpop.f32.mrf.mxu0 }
 0x3ec   :  { %1854 = vst.msk [vmem:[%s3821_s6 + $0x448] sm:$0xff] %vm506_vm1, %v1640_v3  ;;  %1782 = vst.msk [vmem:[%s3821_s6 + $0x208] sm:$0xff] %vm506_vm1, %v1460_v25 }
 0x3ed   :  { %v1642_v22 = vpop.f32.mrf.mxu1  ;;  %v1462_v11 = vpop.f32.mrf.mxu0 }
 0x3ee   :  { %1855 = vst [vmem:[%s3821_s6 + $0x450] sm:$0xff] %v1642_v22  ;;  %1783 = vst [vmem:[%s3821_s6 + $0x210] sm:$0xff] %v1462_v11 }
 0x3ef   :  { %v1644_v0 = vpop.f32.mrf.mxu1  ;;  %v1464_v47 = vpop.f32.mrf.mxu0 }
 0x3f0   :  { %1856 = vst.msk [vmem:[%s3821_s6 + $0x458] sm:$0xff] %vm506_vm1, %v1644_v0  ;;  %1784 = vst.msk [vmem:[%s3821_s6 + $0x218] sm:$0xff] %vm506_vm1, %v1464_v47 }
 0x3f1   :  { %v1648_v50 = vpop.f32.mrf.mxu1  ;;  %v1468_v44 = vpop.f32.mrf.mxu0 }
 0x3f2   :  { %1857 = vst [vmem:[%s3821_s6 + $0x460] sm:$0xff] %v1648_v50  ;;  %1785 = vst [vmem:[%s3821_s6 + $0x220] sm:$0xff] %v1468_v44 }
 0x3f3   :  { %v1650_v42 = vpop.f32.mrf.mxu1  ;;  %v1470_v26 = vpop.f32.mrf.mxu0 }
 0x3f4   :  { %1858 = vst.msk [vmem:[%s3821_s6 + $0x468] sm:$0xff] %vm506_vm1, %v1650_v42  ;;  %1786 = vst.msk [vmem:[%s3821_s6 + $0x228] sm:$0xff] %vm506_vm1, %v1470_v26 }
 0x3f5   :  { %v1652_v7 = vpop.f32.mrf.mxu1  ;;  %v1472_v4 = vpop.f32.mrf.mxu0 }
 0x3f6   :  { %1859 = vst [vmem:[%s3821_s6 + $0x470] sm:$0xff] %v1652_v7  ;;  %1787 = vst [vmem:[%s3821_s6 + $0x230] sm:$0xff] %v1472_v4 }
 0x3f7   :  { %v1654_v34 = vpop.f32.mrf.mxu1  ;;  %v1474_v15 = vpop.f32.mrf.mxu0 }
 0x3f8   :  { %1860 = vst.msk [vmem:[%s3821_s6 + $0x478] sm:$0xff] %vm506_vm1, %v1654_v34  ;;  %1788 = vst.msk [vmem:[%s3821_s6 + $0x238] sm:$0xff] %vm506_vm1, %v1474_v15 }
 0x3f9   :  { %v1658_v13 = vpop.f32.mrf.mxu1 }
 0x3fa   :  { %1861 = vst [vmem:[%s3821_s6 + $0x480] sm:$0xff] %v1658_v13 }
 0x3fb   :  { %v1660_v48 = vpop.f32.mrf.mxu1 }
 0x3fc   :  { %1862 = vst.msk [vmem:[%s3821_s6 + $0x488] sm:$0xff] %vm506_vm1, %v1660_v48 }
 0x3fd   :  { %v1662_v46 = vpop.f32.mrf.mxu1 }
 0x3fe   :  { %1863 = vst [vmem:[%s3821_s6 + $0x490] sm:$0xff] %v1662_v46 }
 0x3ff   :  { %v1664_v43 = vpop.f32.mrf.mxu1 }
 0x400   :  { %1864 = vst.msk [vmem:[%s3821_s6 + $0x498] sm:$0xff] %vm506_vm1, %v1664_v43 }
 0x401   :  { %v1668_v54 = vpop.f32.mrf.mxu1 }
 0x402   :  { %1865 = vst [vmem:[%s3821_s6 + $0x4a0] sm:$0xff] %v1668_v54 }
 0x403   :  { %v1670_v36 = vpop.f32.mrf.mxu1 }
 0x404   :  { %1866 = vst.msk [vmem:[%s3821_s6 + $0x4a8] sm:$0xff] %vm506_vm1, %v1670_v36 }
 0x405   :  { %v1672_v20 = vpop.f32.mrf.mxu1 }
 0x406   :  { %1867 = vst [vmem:[%s3821_s6 + $0x4b0] sm:$0xff] %v1672_v20 }
 0x407   :  { %v1674_v55 = vpop.f32.mrf.mxu1 }
 0x408   :  { %1868 = vst.msk [vmem:[%s3821_s6 + $0x4b8] sm:$0xff] %vm506_vm1, %v1674_v55 }
 0x409   :  { %v1678_v30 = vpop.f32.mrf.mxu1 }
 0x40a   :  { %1869 = vst [vmem:[%s3821_s6 + $0x4c0] sm:$0xff] %v1678_v30 }
 0x40b   :  { %v1680_v14 = vpop.f32.mrf.mxu1 }
 0x40c   :  { %1870 = vst.msk [vmem:[%s3821_s6 + $0x4c8] sm:$0xff] %vm506_vm1, %v1680_v14 }
 0x40d   :  { %v1682_v28 = vpop.f32.mrf.mxu1 }
 0x40e   :  { %1871 = vst [vmem:[%s3821_s6 + $0x4d0] sm:$0xff] %v1682_v28 }
 0x40f   :  { %v1684_v23 = vpop.f32.mrf.mxu1 }
 0x410   :  { %1872 = vst.msk [vmem:[%s3821_s6 + $0x4d8] sm:$0xff] %vm506_vm1, %v1684_v23 }
 0x411   :  { %v1688_v37 = vpop.f32.mrf.mxu1 }
 0x412   :  { %1873 = vst [vmem:[%s3821_s6 + $0x4e0] sm:$0xff] %v1688_v37 }
 0x413   :  { %v1690_v17 = vpop.f32.mrf.mxu1 }
 0x414   :  { %1874 = vst.msk [vmem:[%s3821_s6 + $0x4e8] sm:$0xff] %vm506_vm1, %v1690_v17 }
 0x415   :  { %v1692_v45 = vpop.f32.mrf.mxu1 }
 0x416   :  { %1875 = vst [vmem:[%s3821_s6 + $0x4f0] sm:$0xff] %v1692_v45 }
 0x417   :  { %v1694_v12 = vpop.f32.mrf.mxu1 }
 0x418   :  { %1876 = vst.msk [vmem:[%s3821_s6 + $0x4f8] sm:$0xff] %vm506_vm1, %v1694_v12 }
 0x419   :  { %v1698_v40 = vpop.f32.mrf.mxu1 }
 0x41a   :  { %1877 = vst [vmem:[%s3821_s6 + $0x500] sm:$0xff] %v1698_v40 }
 0x41b   :  { %v1700_v18 = vpop.f32.mrf.mxu1 }
 0x41c   :  { %1878 = vst.msk [vmem:[%s3821_s6 + $0x508] sm:$0xff] %vm506_vm1, %v1700_v18 }
 0x41d   :  { %v1702_v29 = vpop.f32.mrf.mxu1 }
 0x41e   :  { %1879 = vst [vmem:[%s3821_s6 + $0x510] sm:$0xff] %v1702_v29 }
 0x41f   :  { %v1704_v62 = vpop.f32.mrf.mxu1 }
 0x420   :  { %1880 = vst.msk [vmem:[%s3821_s6 + $0x518] sm:$0xff] %vm506_vm1, %v1704_v62 }
 0x421   :  { %v1708_v49 = vpop.f32.mrf.mxu1 }
 0x422   :  { %1881 = vst [vmem:[%s3821_s6 + $0x520] sm:$0xff] %v1708_v49 }
 0x423   :  { %v1710_v16 = vpop.f32.mrf.mxu1 }
 0x424   :  { %1882 = vst.msk [vmem:[%s3821_s6 + $0x528] sm:$0xff] %vm506_vm1, %v1710_v16 }
 0x425   :  { %v1712_v41 = vpop.f32.mrf.mxu1 }
 0x426   :  { %1883 = vst [vmem:[%s3821_s6 + $0x530] sm:$0xff] %v1712_v41 }
 0x427   :  { %v1714_v27 = vpop.f32.mrf.mxu1 }
 0x428   :  { %1884 = vst.msk [vmem:[%s3821_s6 + $0x538] sm:$0xff] %vm506_vm1, %v1714_v27 }

</bundles_post_ra>
